<compile_context>
chip_gen: v7x
topology: tpu7x:2x2x1
jax: 0.10.0
libtpu: 0.0.40
codegen_flags: <defaults>
</compile_context>

<pallas_src>
import jax
import jax.numpy as jnp
from jax.experimental import pallas as pl
from jax.experimental.pallas import tpu as pltpu

VMEM_SPEC = pl.BlockSpec(memory_space=pltpu.MemorySpace.VMEM)


# ----------------------------------------------------------------------------
# Fused forward: one pallas_call for the whole network.
# ----------------------------------------------------------------------------
def man_forward(packed, audio, text, visual):
    B, S = audio.shape[0], audio.shape[1]
    N = B * S
    F = packed["w_mod"].shape[1] // 3          # input_feat_size
    H = packed["w_rec"].shape[0] // 2          # hidden_dim
    H2 = 2 * H
    out_size = packed["fc2_w"].shape[1]

    # ---- host-side layout plumbing (tiny, fused by XLA) --------------------------
    # Time-major rows (t*B + b) so the per-step LSTM gate read is a contiguous slice.
    def tm(a):
        return jnp.transpose(a, (1, 0, 2)).reshape(N, -1)

    x = jnp.concatenate([tm(audio), tm(text), tm(visual)], axis=-1).astype(jnp.float32)

    # Block-sum selector (15F, 16): contracts elementwise q*k products into 9 cosine
    # numerators + 6 squared norms on the MXU (replaces 27 XLU cross-lane reduces).
    s_sum = (jnp.repeat(jnp.arange(15), F)[:, None] ==
             jnp.arange(16)[None, :]).astype(jnp.float32)

    # Row permutation time-major (s*B+b) -> batch-major (b*S+s), applied as one matmul.
    rows = jnp.arange(N)
    perm = jax.nn.one_hot((rows % S) * B + rows // S, N, dtype=jnp.float32)

    # Single lane-dense output slab layout.
    col_h = ((out_size + 7) // 8) * 8
    col_c = col_h + H
    slab_w = max(128, ((col_c + H + 127) // 128) * 128)
    slab_rows = max(N, 2 * B)

    def kernel(x_ref, wmod_ref, bmod_ref,
               wqr_ref, bqr_ref, wkr_ref, bkr_ref,
               wsv_ref, bsv_ref, ssum_ref,
               wih_ref, bg_ref, wrec_ref,
               wfc1_ref, bfc1_ref, wfc2_ref, bfc2_ref, perm_ref,
               out_ref):
        f32 = jnp.float32

        def mm(a, b):
            return jnp.dot(a, b, preferred_element_type=f32)

        # ---- packed modality projections + ReLU (dropout1..3 = identity) ----------
        atv = jnp.maximum(mm(x_ref[...], wmod_ref[...]) + bmod_ref[...], 0.0)  # (N,3F)=[a|t|v]

        # ---- attention: all cosine numerators / norms on the MXU ------------------
        q_rep = mm(atv, wqr_ref[...]) + bqr_ref[...]         # (N, 15F)
        k_rep = mm(atv, wkr_ref[...]) + bkr_ref[...]         # (N, 15F)
        red = mm(q_rep * k_rep, ssum_ref[...])               # (N, 16): 9 nums + 6 sq-norms

        eps = 1e-6
        inv = 1.0 / jnp.maximum(jnp.sqrt(red[:, 9:15]), eps)  # [aq vq tq ak vk tk]
        iaq, ivq, itq = inv[:, 0:1], inv[:, 1:2], inv[:, 2:3]
        iak, ivk, itk = inv[:, 3:4], inv[:, 4:5], inv[:, 5:6]

        def softmax0(c0, c1, c2):
            # cosine values are in [-1, 1] -> exp is stable without max subtraction
            e0, e1, e2 = jnp.exp(c0), jnp.exp(c1), jnp.exp(c2)
            return e0 / (e0 + e1 + e2)

        # Only column 0 of each softmax is ever used by the reference code.
        a0 = softmax0(red[:, 0:1] * iaq * iak, red[:, 1:2] * iaq * ivk, red[:, 2:3] * iaq * itk)
        v0 = softmax0(red[:, 3:4] * ivq * iak, red[:, 4:5] * ivq * ivk, red[:, 5:6] * ivq * itk)
        t0 = softmax0(red[:, 6:7] * itq * iak, red[:, 7:8] * itq * ivk, red[:, 8:9] * itq * itk)

        sum_v = mm(atv, wsv_ref[...]) + bsv_ref[...]          # (N, F) = av + vv + tv (faithful)
        # Residual add without slicing atv apart; stays in the [a|t|v] lane layout.
        lstm_in = atv + jnp.concatenate(
            [a0 * sum_v, t0 * sum_v, v0 * sum_v], axis=-1)    # (N, 3F), time-major rows

        # ---- fused 2-layer LSTM, wavefront schedule --------------------------------
        # Gate columns interleaved [i0 i1 | f0 f1 | g0 g1 | o0 o1]; layer-0 input
        # projection and both layer biases hoisted into one matmul over all steps.
        G = mm(lstm_in, wih_ref[...]) + bg_ref[...]           # (S*B, 8H), time-major

        def fused_step(g, c_prev):
            sg = jax.nn.sigmoid(g)                            # one wide EUP pass
            tg = jnp.tanh(g)                                  # one wide EUP pass
            c_new = sg[:, H2:2 * H2] * c_prev + sg[:, 0:H2] * tg[:, 2 * H2:3 * H2]
            h_new = sg[:, 3 * H2:4 * H2] * jnp.tanh(c_new)
            return h_new, c_new

        h_cat = jnp.zeros((B, H2), f32)                       # [h0 | h1]
        c_cat = jnp.zeros((B, H2), f32)
        zeros_h = jnp.zeros((B, H), f32)
        y1 = []
        h0f = c0f = h1f = c1f = None
        for t in range(S + 1):                                # S+1 combined wavefront steps
            if t == 0:
                g = G[0:B, :]                                 # states are zero: skip matmul
            elif t < S:
                g = G[t * B:(t + 1) * B, :] + mm(h_cat, wrec_ref[...])
            else:
                g = bg_ref[...] + mm(h_cat, wrec_ref[...])    # layer-1 finishes time S-1
            h_new, c_new = fused_step(g, c_cat)
            if t == S - 1:
                h0f, c0f = h_new[:, 0:H], c_new[:, 0:H]       # layer-0 final state
            if t == S:
                h1f, c1f = h_new[:, H:H2], c_new[:, H:H2]     # layer-1 final state
            if t >= 1:
                y1.append(h_new[:, H:H2])                     # layer-1 output for time t-1
            if t == 0:
                # layer-1 has not started: keep its half of the carried state at zero
                h_cat = jnp.concatenate([h_new[:, 0:H], zeros_h], axis=-1)
                c_cat = jnp.concatenate([c_new[:, 0:H], zeros_h], axis=-1)
            elif t < S:
                h_cat, c_cat = h_new, c_new

        y1_tm = jnp.concatenate(y1, axis=0)                   # (S*B, H), time-major

        # ---- head: relu -> fc1 -> relu -> fc2 (dp0/dp1 = identity) -----------------
        z = jnp.maximum(y1_tm, 0.0)
        z = jnp.maximum(mm(z, wfc1_ref[...]) + bfc1_ref[...], 0.0)
        z = mm(z, wfc2_ref[...]) + bfc2_ref[...]              # (S*B, out_size)
        out_bm = mm(perm_ref[...], z)                         # rows -> batch-major (b*S+s)

        # ---- single lane-dense output slab (one writeback DMA) ---------------------
        out_ref[0:N, 0:out_size] = out_bm
        out_ref[0:B, col_h:col_h + H] = h0f
        out_ref[B:2 * B, col_h:col_h + H] = h1f
        out_ref[0:B, col_c:col_c + H] = c0f
        out_ref[B:2 * B, col_c:col_c + H] = c1f

    args = [x,
            packed["w_mod"], packed["b_mod"],
            packed["w_qr"], packed["b_qr"], packed["w_kr"], packed["b_kr"],
            packed["w_sv"], packed["b_sv"], s_sum,
            packed["w_ih"], packed["b_gate"], packed["w_rec"],
            packed["fc1_w"], packed["fc1_b"], packed["fc2_w"], packed["fc2_b"], perm]

    slab = pl.pallas_call(
        kernel,
        in_specs=[VMEM_SPEC] * len(args),
        out_specs=VMEM_SPEC,
        out_shape=jax.ShapeDtypeStruct((slab_rows, slab_w), jnp.float32),
    )(*args)

    out = slab[0:N, 0:out_size]
    hn = slab[0:2 * B, col_h:col_h + H].reshape(2, B, H)
    cn = slab[0:2 * B, col_c:col_c + H].reshape(2, B, H)
    return out, (hn, cn)


# ----------------------------------------------------------------------------
# Synthetic parameters (PyTorch-equivalent layout, already transposed to (in, out)).
# ----------------------------------------------------------------------------
def init_params(key, *, feat, audio_dim, visual_dim, text_dim,
                hidden_dim, fc_dim, output_size):
    keys = iter(jax.random.split(key, 64))

    def w(shape, scale=0.1):
        return (scale * jax.random.normal(next(keys), shape)).astype(jnp.float32)

    p = {}
    p["fc_audio_w"], p["fc_audio_b"] = w((audio_dim, feat)), w((1, feat))
    p["fc_text_w"], p["fc_text_b"] = w((text_dim, feat)), w((1, feat))
    p["fc_visual_w"], p["fc_visual_b"] = w((visual_dim, feat)), w((1, feat))
    for name in ("aq", "vq", "tq", "ak", "vk", "tk", "av", "vv", "tv"):
        p[name + "_w"] = w((feat, feat))
        p[name + "_b"] = w((1, feat))
    H = hidden_dim
    # LSTM: gate order (i, f, g, o); bias represents b_ih + b_hh pre-summed.
    p["lstm0_wih"], p["lstm0_whh"], p["lstm0_b"] = w((feat * 3, 4 * H)), w((H, 4 * H)), w((1, 4 * H))
    p["lstm1_wih"], p["lstm1_whh"], p["lstm1_b"] = w((H, 4 * H)), w((H, 4 * H)), w((1, 4 * H))
    p["fc1_w"], p["fc1_b"] = w((H, fc_dim)), w((1, fc_dim))
    p["fc2_w"], p["fc2_b"] = w((fc_dim, output_size)), w((1, output_size))
    return p


# ----------------------------------------------------------------------------
# Packing into the fused-kernel layouts (all host-side, done once).
# ----------------------------------------------------------------------------
def pack_params(p, *, audio_dim, text_dim, visual_dim, feat):
    F = feat
    f32 = jnp.float32
    Din = audio_dim + text_dim + visual_dim

    # Block-diagonal modality projection: [audio | text | visual] -> [a | t | v]
    w_mod = jnp.zeros((Din, 3 * F), f32)
    w_mod = w_mod.at[:audio_dim, 0:F].set(p["fc_audio_w"])
    w_mod = w_mod.at[audio_dim:audio_dim + text_dim, F:2 * F].set(p["fc_text_w"])
    w_mod = w_mod.at[audio_dim + text_dim:, 2 * F:3 * F].set(p["fc_visual_w"])
    b_mod = jnp.concatenate([p["fc_audio_b"], p["fc_text_b"], p["fc_visual_b"]], axis=1)

    # Lift a per-modality projection into the concatenated [a|t|v] input space.
    src_row = {"a": 0, "t": 1, "v": 2}

    def lift(name):
        w = jnp.zeros((3 * F, F), f32)
        rb = src_row[name[0]]
        return w.at[rb * F:(rb + 1) * F, :].set(p[name + "_w"])

    # Repeated-block q/k weight packs: one matmul each yields every operand the 9
    # cosine numerators and 6 squared norms need, lane-aligned for the block-sum matmul.
    q_seq = ["aq", "aq", "aq", "vq", "vq", "vq", "tq", "tq", "tq",
             "aq", "vq", "tq", "ak", "vk", "tk"]
    k_seq = ["ak", "vk", "tk", "ak", "vk", "tk", "ak", "vk", "tk",
             "aq", "vq", "tq", "ak", "vk", "tk"]
    w_qr = jnp.concatenate([lift(n) for n in q_seq], axis=1)
    b_qr = jnp.concatenate([p[n + "_b"] for n in q_seq], axis=1)
    w_kr = jnp.concatenate([lift(n) for n in k_seq], axis=1)
    b_kr = jnp.concatenate([p[n + "_b"] for n in k_seq], axis=1)

    # Summed value projection: av + vv + tv in one matmul (reference quirk preserved).
    w_sv = lift("av") + lift("vv") + lift("tv")
    b_sv = p["av_b"] + p["vv_b"] + p["tv_b"]

    # Fused 2-layer LSTM weights, interleaved gate layout [i0 i1 f0 f1 g0 g1 o0 o1].
    H = p["lstm0_whh"].shape[0]

    def scatter_gates(w4, layer):
        out = jnp.zeros((w4.shape[0], 8 * H), f32)
        for gi in range(4):
            c = (2 * gi + layer) * H
            out = out.at[:, c:c + H].set(w4[:, gi * H:(gi + 1) * H])
        return out

    w_ih = scatter_gates(p["lstm0_wih"], 0)                                    # (3F, 8H)
    b_gate = scatter_gates(p["lstm0_b"], 0) + scatter_gates(p["lstm1_b"], 1)   # (1, 8H)
    w_rec = jnp.concatenate(
        [scatter_gates(p["lstm0_whh"], 0) + scatter_gates(p["lstm1_wih"], 1),
         scatter_gates(p["lstm1_whh"], 1)], axis=0)                            # (2H, 8H)

    packed = {"w_mod": w_mod, "b_mod": b_mod,
              "w_qr": w_qr, "b_qr": b_qr, "w_kr": w_kr, "b_kr": b_kr,
              "w_sv": w_sv, "b_sv": b_sv,
              "w_ih": w_ih, "b_gate": b_gate, "w_rec": w_rec}
    for k in ("fc1_w", "fc1_b", "fc2_w", "fc2_b"):
        packed[k] = p[k]
    return packed


# ----------------------------------------------------------------------------
# Pure-JAX reference (mirrors the PyTorch module op-by-op) for a correctness check.
# ----------------------------------------------------------------------------
def man_reference(p, audio, text, visual):
    B, S, _ = audio.shape
    F = p["fc_audio_w"].shape[1]
    H = p["lstm0_whh"].shape[0]

    def dot(a, b):
        return jnp.dot(a, b, precision=jax.lax.Precision.HIGHEST)

    a = jax.nn.relu(dot(audio.reshape(B * S, -1), p["fc_audio_w"]) + p["fc_audio_b"])
    t = jax.nn.relu(dot(text.reshape(B * S, -1), p["fc_text_w"]) + p["fc_text_b"])
    v = jax.nn.relu(dot(visual.reshape(B * S, -1), p["fc_visual_w"]) + p["fc_visual_b"])

    def lin(x, name):
        return dot(x, p[name + "_w"]) + p[name + "_b"]

    aq, vq, tq = lin(a, "aq"), lin(v, "vq"), lin(t, "tq")
    ak, vk, tk = lin(a, "ak"), lin(v, "vk"), lin(t, "tk")
    av, vv, tv = lin(a, "av"), lin(v, "vv"), lin(t, "tv")

    def cos(x, y, eps=1e-6):
        nx = jnp.maximum(jnp.sqrt(jnp.sum(x * x, -1)), eps)
        ny = jnp.maximum(jnp.sqrt(jnp.sum(y * y, -1)), eps)
        return jnp.sum(x * y, -1) / (nx * ny)

    def att_col0(q):
        s = jnp.stack([cos(q, ak), cos(q, vk), cos(q, tk)], axis=1)
        return jax.nn.softmax(s, axis=1)[:, 0:1]

    a0, v0, t0 = att_col0(aq), att_col0(vq), att_col0(tq)
    sum_v = av + vv + tv
    a2, t2, v2 = a + a0 * sum_v, t + t0 * sum_v, v + v0 * sum_v

    lstm_in = jnp.concatenate(
        [a2.reshape(B, S, F), t2.reshape(B, S, F), v2.reshape(B, S, F)], axis=-1)

    def lstm_layer(x, wih, whh, b):
        h = jnp.zeros((B, H), jnp.float32)
        c = jnp.zeros((B, H), jnp.float32)
        ys = []
        for s in range(x.shape[1]):
            g = dot(x[:, s, :], wih) + dot(h, whh) + b
            i = jax.nn.sigmoid(g[:, 0:H])
            f = jax.nn.sigmoid(g[:, H:2 * H])
            gg = jnp.tanh(g[:, 2 * H:3 * H])
            o = jax.nn.sigmoid(g[:, 3 * H:4 * H])
            c = f * c + i * gg
            h = o * jnp.tanh(c)
            ys.append(h)
        return jnp.stack(ys, axis=1), h, c

    y0, h0, c0 = lstm_layer(lstm_in, p["lstm0_wih"], p["lstm0_whh"], p["lstm0_b"])
    y1, h1, c1 = lstm_layer(y0, p["lstm1_wih"], p["lstm1_whh"], p["lstm1_b"])

    out = jax.nn.relu(y1.reshape(B * S, H))
    out = jax.nn.relu(dot(out, p["fc1_w"]) + p["fc1_b"])
    out = dot(out, p["fc2_w"]) + p["fc2_b"]
    return out, (jnp.stack([h0, h1], 0), jnp.stack([c0, c1], 0))


if __name__ == "__main__":
    B, S = 2, 8
    audio_dim, visual_dim, text_dim = 12, 20, 24
    feat = 16          # input_feat_size
    hidden_dim = 32
    fc_dim = 24
    output_size = 4

    key = jax.random.PRNGKey(0)
    kp, ka, kt, kv = jax.random.split(key, 4)
    raw = init_params(kp, feat=feat, audio_dim=audio_dim, visual_dim=visual_dim,
                      text_dim=text_dim, hidden_dim=hidden_dim, fc_dim=fc_dim,
                      output_size=output_size)
    packed = pack_params(raw, audio_dim=audio_dim, text_dim=text_dim,
                         visual_dim=visual_dim, feat=feat)

    audio = jax.random.normal(ka, (B, S, audio_dim), dtype=jnp.float32)
    text = jax.random.normal(kt, (B, S, text_dim), dtype=jnp.float32)
    visual = jax.random.normal(kv, (B, S, visual_dim), dtype=jnp.float32)

    out, (h_n, c_n) = jax.jit(man_forward)(packed, audio, text, visual)
    jax.block_until_ready((out, h_n, c_n))

    assert out.shape == (B * S, output_size)
    assert h_n.shape == (2, B, hidden_dim)
    assert c_n.shape == (2, B, hidden_dim)

    # Correctness check against a pure-JAX reference of the PyTorch module.
    ref_out, (ref_hn, ref_cn) = man_reference(raw, audio, text, visual)
    for got, want in ((out, ref_out), (h_n, ref_hn), (c_n, ref_cn)):
        err = float(jnp.max(jnp.abs(got - want)))
        assert err < 2e-2, f"kernel/reference mismatch, max abs err = {err}"

    print("KERNEL_OK")
</pallas_src>

<mosaic_0001>
module attributes {stable_mosaic.version = 11 : i64} {
  func.func @kernel(%arg0: memref<16x56xf32, #tpu.memory_space<vmem>>, %arg1: memref<56x48xf32, #tpu.memory_space<vmem>>, %arg2: memref<1x48xf32, #tpu.memory_space<vmem>>, %arg3: memref<48x240xf32, #tpu.memory_space<vmem>>, %arg4: memref<1x240xf32, #tpu.memory_space<vmem>>, %arg5: memref<48x240xf32, #tpu.memory_space<vmem>>, %arg6: memref<1x240xf32, #tpu.memory_space<vmem>>, %arg7: memref<48x16xf32, #tpu.memory_space<vmem>>, %arg8: memref<1x16xf32, #tpu.memory_space<vmem>>, %arg9: memref<240x16xf32, #tpu.memory_space<vmem>>, %arg10: memref<48x256xf32, #tpu.memory_space<vmem>>, %arg11: memref<1x256xf32, #tpu.memory_space<vmem>>, %arg12: memref<64x256xf32, #tpu.memory_space<vmem>>, %arg13: memref<32x24xf32, #tpu.memory_space<vmem>>, %arg14: memref<1x24xf32, #tpu.memory_space<vmem>>, %arg15: memref<24x4xf32, #tpu.memory_space<vmem>>, %arg16: memref<1x4xf32, #tpu.memory_space<vmem>>, %arg17: memref<16x16xf32, #tpu.memory_space<vmem>>, %arg18: memref<16x128xf32, #tpu.memory_space<vmem>>) attributes {dimension_semantics = [], scalar_prefetch = 0 : i64, scratch_operands = 0 : i64, tpu.core_type = #tpu.core_type<tc>} {
    %c0 = arith.constant 0 : index
    %c0_0 = arith.constant 0 : index
    %0 = vector.load %arg0[%c0, %c0_0] : memref<16x56xf32, #tpu.memory_space<vmem>>, vector<16x56xf32>
    %c0_1 = arith.constant 0 : index
    %c0_2 = arith.constant 0 : index
    %1 = vector.load %arg1[%c0_1, %c0_2] : memref<56x48xf32, #tpu.memory_space<vmem>>, vector<56x48xf32>
    %cst = arith.constant dense<0.000000e+00> : vector<16x48xf32>
    %2 = tpu.matmul %0, %1, %cst {dimension_numbers = #tpu.dot_dimension_numbers<[1], [0], [0], [1], [0, 0, 1, 1], [], []>} : vector<16x56xf32>, vector<56x48xf32>, vector<16x48xf32> -> vector<16x48xf32>
    %c0_3 = arith.constant 0 : index
    %c0_4 = arith.constant 0 : index
    %3 = vector.load %arg2[%c0_3, %c0_4] : memref<1x48xf32, #tpu.memory_space<vmem>>, vector<1x48xf32>
    %4 = vector.broadcast %3 : vector<1x48xf32> to vector<16x48xf32>
    %5 = arith.addf %2, %4 : vector<16x48xf32>
    %cst_5 = arith.constant 0.000000e+00 : f32
    %6 = vector.broadcast %cst_5 : f32 to vector<16x48xf32>
    %7 = arith.maximumf %5, %6 : vector<16x48xf32>
    %c0_6 = arith.constant 0 : index
    %c0_7 = arith.constant 0 : index
    %8 = vector.load %arg3[%c0_6, %c0_7] : memref<48x240xf32, #tpu.memory_space<vmem>>, vector<48x240xf32>
    %cst_8 = arith.constant dense<0.000000e+00> : vector<16x240xf32>
    %9 = tpu.matmul %7, %8, %cst_8 {dimension_numbers = #tpu.dot_dimension_numbers<[1], [0], [0], [1], [0, 0, 1, 1], [], []>} : vector<16x48xf32>, vector<48x240xf32>, vector<16x240xf32> -> vector<16x240xf32>
    %c0_9 = arith.constant 0 : index
    %c0_10 = arith.constant 0 : index
    %10 = vector.load %arg4[%c0_9, %c0_10] : memref<1x240xf32, #tpu.memory_space<vmem>>, vector<1x240xf32>
    %11 = vector.broadcast %10 : vector<1x240xf32> to vector<16x240xf32>
    %12 = arith.addf %9, %11 : vector<16x240xf32>
    %c0_11 = arith.constant 0 : index
    %c0_12 = arith.constant 0 : index
    %13 = vector.load %arg5[%c0_11, %c0_12] : memref<48x240xf32, #tpu.memory_space<vmem>>, vector<48x240xf32>
    %cst_13 = arith.constant dense<0.000000e+00> : vector<16x240xf32>
    %14 = tpu.matmul %7, %13, %cst_13 {dimension_numbers = #tpu.dot_dimension_numbers<[1], [0], [0], [1], [0, 0, 1, 1], [], []>} : vector<16x48xf32>, vector<48x240xf32>, vector<16x240xf32> -> vector<16x240xf32>
    %c0_14 = arith.constant 0 : index
    %c0_15 = arith.constant 0 : index
    %15 = vector.load %arg6[%c0_14, %c0_15] : memref<1x240xf32, #tpu.memory_space<vmem>>, vector<1x240xf32>
    %16 = vector.broadcast %15 : vector<1x240xf32> to vector<16x240xf32>
    %17 = arith.addf %14, %16 : vector<16x240xf32>
    %18 = arith.mulf %12, %17 : vector<16x240xf32>
    %c0_16 = arith.constant 0 : index
    %c0_17 = arith.constant 0 : index
    %19 = vector.load %arg9[%c0_16, %c0_17] : memref<240x16xf32, #tpu.memory_space<vmem>>, vector<240x16xf32>
    %cst_18 = arith.constant dense<0.000000e+00> : vector<16x16xf32>
    %20 = tpu.matmul %18, %19, %cst_18 {dimension_numbers = #tpu.dot_dimension_numbers<[1], [0], [0], [1], [0, 0, 1, 1], [], []>} : vector<16x240xf32>, vector<240x16xf32>, vector<16x16xf32> -> vector<16x16xf32>
    %21 = vector.extract_strided_slice %20 {offsets = [0, 9], sizes = [16, 6], strides = [1, 1]} : vector<16x16xf32> to vector<16x6xf32>
    %22 = math.sqrt %21 : vector<16x6xf32>
    %cst_19 = arith.constant 9.99999997E-7 : f32
    %23 = vector.broadcast %cst_19 : f32 to vector<16x6xf32>
    %24 = arith.maximumf %22, %23 : vector<16x6xf32>
    %cst_20 = arith.constant 1.000000e+00 : f32
    %25 = vector.broadcast %cst_20 : f32 to vector<16x6xf32>
    %26 = arith.divf %25, %24 : vector<16x6xf32>
    %27 = vector.extract_strided_slice %26 {offsets = [0, 0], sizes = [16, 1], strides = [1, 1]} : vector<16x6xf32> to vector<16x1xf32>
    %28 = vector.extract_strided_slice %26 {offsets = [0, 1], sizes = [16, 1], strides = [1, 1]} : vector<16x6xf32> to vector<16x1xf32>
    %29 = vector.extract_strided_slice %26 {offsets = [0, 2], sizes = [16, 1], strides = [1, 1]} : vector<16x6xf32> to vector<16x1xf32>
    %30 = vector.extract_strided_slice %26 {offsets = [0, 3], sizes = [16, 1], strides = [1, 1]} : vector<16x6xf32> to vector<16x1xf32>
    %31 = vector.extract_strided_slice %26 {offsets = [0, 4], sizes = [16, 1], strides = [1, 1]} : vector<16x6xf32> to vector<16x1xf32>
    %32 = vector.extract_strided_slice %26 {offsets = [0, 5], sizes = [16, 1], strides = [1, 1]} : vector<16x6xf32> to vector<16x1xf32>
    %33 = vector.extract_strided_slice %20 {offsets = [0, 0], sizes = [16, 1], strides = [1, 1]} : vector<16x16xf32> to vector<16x1xf32>
    %34 = arith.mulf %33, %27 : vector<16x1xf32>
    %35 = arith.mulf %34, %30 : vector<16x1xf32>
    %36 = vector.extract_strided_slice %20 {offsets = [0, 1], sizes = [16, 1], strides = [1, 1]} : vector<16x16xf32> to vector<16x1xf32>
    %37 = arith.mulf %36, %27 : vector<16x1xf32>
    %38 = arith.mulf %37, %31 : vector<16x1xf32>
    %39 = vector.extract_strided_slice %20 {offsets = [0, 2], sizes = [16, 1], strides = [1, 1]} : vector<16x16xf32> to vector<16x1xf32>
    %40 = arith.mulf %39, %27 : vector<16x1xf32>
    %41 = arith.mulf %40, %32 : vector<16x1xf32>
    %42 = math.exp %35 : vector<16x1xf32>
    %43 = math.exp %38 : vector<16x1xf32>
    %44 = math.exp %41 : vector<16x1xf32>
    %45 = arith.addf %42, %43 : vector<16x1xf32>
    %46 = arith.addf %45, %44 : vector<16x1xf32>
    %47 = arith.divf %42, %46 : vector<16x1xf32>
    %48 = vector.extract_strided_slice %20 {offsets = [0, 3], sizes = [16, 1], strides = [1, 1]} : vector<16x16xf32> to vector<16x1xf32>
    %49 = arith.mulf %48, %28 : vector<16x1xf32>
    %50 = arith.mulf %49, %30 : vector<16x1xf32>
    %51 = vector.extract_strided_slice %20 {offsets = [0, 4], sizes = [16, 1], strides = [1, 1]} : vector<16x16xf32> to vector<16x1xf32>
    %52 = arith.mulf %51, %28 : vector<16x1xf32>
    %53 = arith.mulf %52, %31 : vector<16x1xf32>
    %54 = vector.extract_strided_slice %20 {offsets = [0, 5], sizes = [16, 1], strides = [1, 1]} : vector<16x16xf32> to vector<16x1xf32>
    %55 = arith.mulf %54, %28 : vector<16x1xf32>
    %56 = arith.mulf %55, %32 : vector<16x1xf32>
    %57 = math.exp %50 : vector<16x1xf32>
    %58 = math.exp %53 : vector<16x1xf32>
    %59 = math.exp %56 : vector<16x1xf32>
    %60 = arith.addf %57, %58 : vector<16x1xf32>
    %61 = arith.addf %60, %59 : vector<16x1xf32>
    %62 = arith.divf %57, %61 : vector<16x1xf32>
    %63 = vector.extract_strided_slice %20 {offsets = [0, 6], sizes = [16, 1], strides = [1, 1]} : vector<16x16xf32> to vector<16x1xf32>
    %64 = arith.mulf %63, %29 : vector<16x1xf32>
    %65 = arith.mulf %64, %30 : vector<16x1xf32>
    %66 = vector.extract_strided_slice %20 {offsets = [0, 7], sizes = [16, 1], strides = [1, 1]} : vector<16x16xf32> to vector<16x1xf32>
    %67 = arith.mulf %66, %29 : vector<16x1xf32>
    %68 = arith.mulf %67, %31 : vector<16x1xf32>
    %69 = vector.extract_strided_slice %20 {offsets = [0, 8], sizes = [16, 1], strides = [1, 1]} : vector<16x16xf32> to vector<16x1xf32>
    %70 = arith.mulf %69, %29 : vector<16x1xf32>
    %71 = arith.mulf %70, %32 : vector<16x1xf32>
    %72 = math.exp %65 : vector<16x1xf32>
    %73 = math.exp %68 : vector<16x1xf32>
    %74 = math.exp %71 : vector<16x1xf32>
    %75 = arith.addf %72, %73 : vector<16x1xf32>
    %76 = arith.addf %75, %74 : vector<16x1xf32>
    %77 = arith.divf %72, %76 : vector<16x1xf32>
    %c0_21 = arith.constant 0 : index
    %c0_22 = arith.constant 0 : index
    %78 = vector.load %arg7[%c0_21, %c0_22] : memref<48x16xf32, #tpu.memory_space<vmem>>, vector<48x16xf32>
    %cst_23 = arith.constant dense<0.000000e+00> : vector<16x16xf32>
    %79 = tpu.matmul %7, %78, %cst_23 {dimension_numbers = #tpu.dot_dimension_numbers<[1], [0], [0], [1], [0, 0, 1, 1], [], []>} : vector<16x48xf32>, vector<48x16xf32>, vector<16x16xf32> -> vector<16x16xf32>
    %c0_24 = arith.constant 0 : index
    %c0_25 = arith.constant 0 : index
    %80 = vector.load %arg8[%c0_24, %c0_25] : memref<1x16xf32, #tpu.memory_space<vmem>>, vector<1x16xf32>
    %81 = vector.broadcast %80 : vector<1x16xf32> to vector<16x16xf32>
    %82 = arith.addf %79, %81 : vector<16x16xf32>
    %83 = vector.broadcast %47 : vector<16x1xf32> to vector<16x16xf32>
    %84 = arith.mulf %83, %82 : vector<16x16xf32>
    %85 = vector.broadcast %77 : vector<16x1xf32> to vector<16x16xf32>
    %86 = arith.mulf %85, %82 : vector<16x16xf32>
    %87 = vector.broadcast %62 : vector<16x1xf32> to vector<16x16xf32>
    %88 = arith.mulf %87, %82 : vector<16x16xf32>
    %89 = tpu.concatenate %84, %86, %88 in 1 : vector<16x16xf32>, vector<16x16xf32>, vector<16x16xf32> -> vector<16x48xf32>
    %90 = arith.addf %7, %89 : vector<16x48xf32>
    %c0_26 = arith.constant 0 : index
    %c0_27 = arith.constant 0 : index
    %91 = vector.load %arg10[%c0_26, %c0_27] : memref<48x256xf32, #tpu.memory_space<vmem>>, vector<48x256xf32>
    %cst_28 = arith.constant dense<0.000000e+00> : vector<16x256xf32>
    %92 = tpu.matmul %90, %91, %cst_28 {dimension_numbers = #tpu.dot_dimension_numbers<[1], [0], [0], [1], [0, 0, 1, 1], [], []>} : vector<16x48xf32>, vector<48x256xf32>, vector<16x256xf32> -> vector<16x256xf32>
    %c0_29 = arith.constant 0 : index
    %c0_30 = arith.constant 0 : index
    %93 = vector.load %arg11[%c0_29, %c0_30] : memref<1x256xf32, #tpu.memory_space<vmem>>, vector<1x256xf32>
    %94 = vector.broadcast %93 : vector<1x256xf32> to vector<16x256xf32>
    %95 = arith.addf %92, %94 : vector<16x256xf32>
    %cst_31 = arith.constant 0.000000e+00 : f32
    %96 = vector.broadcast %cst_31 : f32 to vector<2x64xf32>
    %cst_32 = arith.constant 0.000000e+00 : f32
    %97 = vector.broadcast %cst_32 : f32 to vector<2x32xf32>
    %98 = vector.extract_strided_slice %95 {offsets = [0, 0], sizes = [2, 256], strides = [1, 1]} : vector<16x256xf32> to vector<2x256xf32>
    %99 = arith.negf %98 : vector<2x256xf32>
    %100 = math.exp %99 : vector<2x256xf32>
    %cst_33 = arith.constant 1.000000e+00 : f32
    %101 = vector.broadcast %cst_33 : f32 to vector<2x256xf32>
    %102 = arith.addf %101, %100 : vector<2x256xf32>
    %103 = arith.divf %101, %102 : vector<2x256xf32>
    %104 = math.tanh %98 : vector<2x256xf32>
    %105 = vector.extract_strided_slice %103 {offsets = [0, 64], sizes = [2, 64], strides = [1, 1]} : vector<2x256xf32> to vector<2x64xf32>
    %106 = arith.mulf %105, %96 : vector<2x64xf32>
    %107 = vector.extract_strided_slice %103 {offsets = [0, 0], sizes = [2, 64], strides = [1, 1]} : vector<2x256xf32> to vector<2x64xf32>
    %108 = vector.extract_strided_slice %104 {offsets = [0, 128], sizes = [2, 64], strides = [1, 1]} : vector<2x256xf32> to vector<2x64xf32>
    %109 = arith.mulf %107, %108 : vector<2x64xf32>
    %110 = arith.addf %106, %109 : vector<2x64xf32>
    %111 = vector.extract_strided_slice %103 {offsets = [0, 192], sizes = [2, 64], strides = [1, 1]} : vector<2x256xf32> to vector<2x64xf32>
    %112 = math.tanh %110 : vector<2x64xf32>
    %113 = arith.mulf %111, %112 : vector<2x64xf32>
    %114 = vector.extract_strided_slice %113 {offsets = [0, 0], sizes = [2, 32], strides = [1, 1]} : vector<2x64xf32> to vector<2x32xf32>
    %115 = tpu.concatenate %114, %97 in 1 : vector<2x32xf32>, vector<2x32xf32> -> vector<2x64xf32>
    %116 = vector.extract_strided_slice %110 {offsets = [0, 0], sizes = [2, 32], strides = [1, 1]} : vector<2x64xf32> to vector<2x32xf32>
    %117 = tpu.concatenate %116, %97 in 1 : vector<2x32xf32>, vector<2x32xf32> -> vector<2x64xf32>
    %118 = vector.extract_strided_slice %95 {offsets = [2, 0], sizes = [2, 256], strides = [1, 1]} : vector<16x256xf32> to vector<2x256xf32>
    %c0_34 = arith.constant 0 : index
    %c0_35 = arith.constant 0 : index
    %119 = vector.load %arg12[%c0_34, %c0_35] : memref<64x256xf32, #tpu.memory_space<vmem>>, vector<64x256xf32>
    %cst_36 = arith.constant dense<0.000000e+00> : vector<2x256xf32>
    %120 = tpu.matmul %115, %119, %cst_36 {dimension_numbers = #tpu.dot_dimension_numbers<[1], [0], [0], [1], [0, 0, 1, 1], [], []>} : vector<2x64xf32>, vector<64x256xf32>, vector<2x256xf32> -> vector<2x256xf32>
    %121 = arith.addf %118, %120 : vector<2x256xf32>
    %122 = arith.negf %121 : vector<2x256xf32>
    %123 = math.exp %122 : vector<2x256xf32>
    %cst_37 = arith.constant 1.000000e+00 : f32
    %124 = vector.broadcast %cst_37 : f32 to vector<2x256xf32>
    %125 = arith.addf %124, %123 : vector<2x256xf32>
    %126 = arith.divf %124, %125 : vector<2x256xf32>
    %127 = math.tanh %121 : vector<2x256xf32>
    %128 = vector.extract_strided_slice %126 {offsets = [0, 64], sizes = [2, 64], strides = [1, 1]} : vector<2x256xf32> to vector<2x64xf32>
    %129 = arith.mulf %128, %117 : vector<2x64xf32>
    %130 = vector.extract_strided_slice %126 {offsets = [0, 0], sizes = [2, 64], strides = [1, 1]} : vector<2x256xf32> to vector<2x64xf32>
    %131 = vector.extract_strided_slice %127 {offsets = [0, 128], sizes = [2, 64], strides = [1, 1]} : vector<2x256xf32> to vector<2x64xf32>
    %132 = arith.mulf %130, %131 : vector<2x64xf32>
    %133 = arith.addf %129, %132 : vector<2x64xf32>
    %134 = vector.extract_strided_slice %126 {offsets = [0, 192], sizes = [2, 64], strides = [1, 1]} : vector<2x256xf32> to vector<2x64xf32>
    %135 = math.tanh %133 : vector<2x64xf32>
    %136 = arith.mulf %134, %135 : vector<2x64xf32>
    %137 = vector.extract_strided_slice %136 {offsets = [0, 32], sizes = [2, 32], strides = [1, 1]} : vector<2x64xf32> to vector<2x32xf32>
    %138 = vector.extract_strided_slice %95 {offsets = [4, 0], sizes = [2, 256], strides = [1, 1]} : vector<16x256xf32> to vector<2x256xf32>
    %c0_38 = arith.constant 0 : index
    %c0_39 = arith.constant 0 : index
    %139 = vector.load %arg12[%c0_38, %c0_39] : memref<64x256xf32, #tpu.memory_space<vmem>>, vector<64x256xf32>
    %cst_40 = arith.constant dense<0.000000e+00> : vector<2x256xf32>
    %140 = tpu.matmul %136, %139, %cst_40 {dimension_numbers = #tpu.dot_dimension_numbers<[1], [0], [0], [1], [0, 0, 1, 1], [], []>} : vector<2x64xf32>, vector<64x256xf32>, vector<2x256xf32> -> vector<2x256xf32>
    %141 = arith.addf %138, %140 : vector<2x256xf32>
    %142 = arith.negf %141 : vector<2x256xf32>
    %143 = math.exp %142 : vector<2x256xf32>
    %cst_41 = arith.constant 1.000000e+00 : f32
    %144 = vector.broadcast %cst_41 : f32 to vector<2x256xf32>
    %145 = arith.addf %144, %143 : vector<2x256xf32>
    %146 = arith.divf %144, %145 : vector<2x256xf32>
    %147 = math.tanh %141 : vector<2x256xf32>
    %148 = vector.extract_strided_slice %146 {offsets = [0, 64], sizes = [2, 64], strides = [1, 1]} : vector<2x256xf32> to vector<2x64xf32>
    %149 = arith.mulf %148, %133 : vector<2x64xf32>
    %150 = vector.extract_strided_slice %146 {offsets = [0, 0], sizes = [2, 64], strides = [1, 1]} : vector<2x256xf32> to vector<2x64xf32>
    %151 = vector.extract_strided_slice %147 {offsets = [0, 128], sizes = [2, 64], strides = [1, 1]} : vector<2x256xf32> to vector<2x64xf32>
    %152 = arith.mulf %150, %151 : vector<2x64xf32>
    %153 = arith.addf %149, %152 : vector<2x64xf32>
    %154 = vector.extract_strided_slice %146 {offsets = [0, 192], sizes = [2, 64], strides = [1, 1]} : vector<2x256xf32> to vector<2x64xf32>
    %155 = math.tanh %153 : vector<2x64xf32>
    %156 = arith.mulf %154, %155 : vector<2x64xf32>
    %157 = vector.extract_strided_slice %156 {offsets = [0, 32], sizes = [2, 32], strides = [1, 1]} : vector<2x64xf32> to vector<2x32xf32>
    %158 = vector.extract_strided_slice %95 {offsets = [6, 0], sizes = [2, 256], strides = [1, 1]} : vector<16x256xf32> to vector<2x256xf32>
    %c0_42 = arith.constant 0 : index
    %c0_43 = arith.constant 0 : index
    %159 = vector.load %arg12[%c0_42, %c0_43] : memref<64x256xf32, #tpu.memory_space<vmem>>, vector<64x256xf32>
    %cst_44 = arith.constant dense<0.000000e+00> : vector<2x256xf32>
    %160 = tpu.matmul %156, %159, %cst_44 {dimension_numbers = #tpu.dot_dimension_numbers<[1], [0], [0], [1], [0, 0, 1, 1], [], []>} : vector<2x64xf32>, vector<64x256xf32>, vector<2x256xf32> -> vector<2x256xf32>
    %161 = arith.addf %158, %160 : vector<2x256xf32>
    %162 = arith.negf %161 : vector<2x256xf32>
    %163 = math.exp %162 : vector<2x256xf32>
    %cst_45 = arith.constant 1.000000e+00 : f32
    %164 = vector.broadcast %cst_45 : f32 to vector<2x256xf32>
    %165 = arith.addf %164, %163 : vector<2x256xf32>
    %166 = arith.divf %164, %165 : vector<2x256xf32>
    %167 = math.tanh %161 : vector<2x256xf32>
    %168 = vector.extract_strided_slice %166 {offsets = [0, 64], sizes = [2, 64], strides = [1, 1]} : vector<2x256xf32> to vector<2x64xf32>
    %169 = arith.mulf %168, %153 : vector<2x64xf32>
    %170 = vector.extract_strided_slice %166 {offsets = [0, 0], sizes = [2, 64], strides = [1, 1]} : vector<2x256xf32> to vector<2x64xf32>
    %171 = vector.extract_strided_slice %167 {offsets = [0, 128], sizes = [2, 64], strides = [1, 1]} : vector<2x256xf32> to vector<2x64xf32>
    %172 = arith.mulf %170, %171 : vector<2x64xf32>
    %173 = arith.addf %169, %172 : vector<2x64xf32>
    %174 = vector.extract_strided_slice %166 {offsets = [0, 192], sizes = [2, 64], strides = [1, 1]} : vector<2x256xf32> to vector<2x64xf32>
    %175 = math.tanh %173 : vector<2x64xf32>
    %176 = arith.mulf %174, %175 : vector<2x64xf32>
    %177 = vector.extract_strided_slice %176 {offsets = [0, 32], sizes = [2, 32], strides = [1, 1]} : vector<2x64xf32> to vector<2x32xf32>
    %178 = vector.extract_strided_slice %95 {offsets = [8, 0], sizes = [2, 256], strides = [1, 1]} : vector<16x256xf32> to vector<2x256xf32>
    %c0_46 = arith.constant 0 : index
    %c0_47 = arith.constant 0 : index
    %179 = vector.load %arg12[%c0_46, %c0_47] : memref<64x256xf32, #tpu.memory_space<vmem>>, vector<64x256xf32>
    %cst_48 = arith.constant dense<0.000000e+00> : vector<2x256xf32>
    %180 = tpu.matmul %176, %179, %cst_48 {dimension_numbers = #tpu.dot_dimension_numbers<[1], [0], [0], [1], [0, 0, 1, 1], [], []>} : vector<2x64xf32>, vector<64x256xf32>, vector<2x256xf32> -> vector<2x256xf32>
    %181 = arith.addf %178, %180 : vector<2x256xf32>
    %182 = arith.negf %181 : vector<2x256xf32>
    %183 = math.exp %182 : vector<2x256xf32>
    %cst_49 = arith.constant 1.000000e+00 : f32
    %184 = vector.broadcast %cst_49 : f32 to vector<2x256xf32>
    %185 = arith.addf %184, %183 : vector<2x256xf32>
    %186 = arith.divf %184, %185 : vector<2x256xf32>
    %187 = math.tanh %181 : vector<2x256xf32>
    %188 = vector.extract_strided_slice %186 {offsets = [0, 64], sizes = [2, 64], strides = [1, 1]} : vector<2x256xf32> to vector<2x64xf32>
    %189 = arith.mulf %188, %173 : vector<2x64xf32>
    %190 = vector.extract_strided_slice %186 {offsets = [0, 0], sizes = [2, 64], strides = [1, 1]} : vector<2x256xf32> to vector<2x64xf32>
    %191 = vector.extract_strided_slice %187 {offsets = [0, 128], sizes = [2, 64], strides = [1, 1]} : vector<2x256xf32> to vector<2x64xf32>
    %192 = arith.mulf %190, %191 : vector<2x64xf32>
    %193 = arith.addf %189, %192 : vector<2x64xf32>
    %194 = vector.extract_strided_slice %186 {offsets = [0, 192], sizes = [2, 64], strides = [1, 1]} : vector<2x256xf32> to vector<2x64xf32>
    %195 = math.tanh %193 : vector<2x64xf32>
    %196 = arith.mulf %194, %195 : vector<2x64xf32>
    %197 = vector.extract_strided_slice %196 {offsets = [0, 32], sizes = [2, 32], strides = [1, 1]} : vector<2x64xf32> to vector<2x32xf32>
    %198 = vector.extract_strided_slice %95 {offsets = [10, 0], sizes = [2, 256], strides = [1, 1]} : vector<16x256xf32> to vector<2x256xf32>
    %c0_50 = arith.constant 0 : index
    %c0_51 = arith.constant 0 : index
    %199 = vector.load %arg12[%c0_50, %c0_51] : memref<64x256xf32, #tpu.memory_space<vmem>>, vector<64x256xf32>
    %cst_52 = arith.constant dense<0.000000e+00> : vector<2x256xf32>
    %200 = tpu.matmul %196, %199, %cst_52 {dimension_numbers = #tpu.dot_dimension_numbers<[1], [0], [0], [1], [0, 0, 1, 1], [], []>} : vector<2x64xf32>, vector<64x256xf32>, vector<2x256xf32> -> vector<2x256xf32>
    %201 = arith.addf %198, %200 : vector<2x256xf32>
    %202 = arith.negf %201 : vector<2x256xf32>
    %203 = math.exp %202 : vector<2x256xf32>
    %cst_53 = arith.constant 1.000000e+00 : f32
    %204 = vector.broadcast %cst_53 : f32 to vector<2x256xf32>
    %205 = arith.addf %204, %203 : vector<2x256xf32>
    %206 = arith.divf %204, %205 : vector<2x256xf32>
    %207 = math.tanh %201 : vector<2x256xf32>
    %208 = vector.extract_strided_slice %206 {offsets = [0, 64], sizes = [2, 64], strides = [1, 1]} : vector<2x256xf32> to vector<2x64xf32>
    %209 = arith.mulf %208, %193 : vector<2x64xf32>
    %210 = vector.extract_strided_slice %206 {offsets = [0, 0], sizes = [2, 64], strides = [1, 1]} : vector<2x256xf32> to vector<2x64xf32>
    %211 = vector.extract_strided_slice %207 {offsets = [0, 128], sizes = [2, 64], strides = [1, 1]} : vector<2x256xf32> to vector<2x64xf32>
    %212 = arith.mulf %210, %211 : vector<2x64xf32>
    %213 = arith.addf %209, %212 : vector<2x64xf32>
    %214 = vector.extract_strided_slice %206 {offsets = [0, 192], sizes = [2, 64], strides = [1, 1]} : vector<2x256xf32> to vector<2x64xf32>
    %215 = math.tanh %213 : vector<2x64xf32>
    %216 = arith.mulf %214, %215 : vector<2x64xf32>
    %217 = vector.extract_strided_slice %216 {offsets = [0, 32], sizes = [2, 32], strides = [1, 1]} : vector<2x64xf32> to vector<2x32xf32>
    %218 = vector.extract_strided_slice %95 {offsets = [12, 0], sizes = [2, 256], strides = [1, 1]} : vector<16x256xf32> to vector<2x256xf32>
    %c0_54 = arith.constant 0 : index
    %c0_55 = arith.constant 0 : index
    %219 = vector.load %arg12[%c0_54, %c0_55] : memref<64x256xf32, #tpu.memory_space<vmem>>, vector<64x256xf32>
    %cst_56 = arith.constant dense<0.000000e+00> : vector<2x256xf32>
    %220 = tpu.matmul %216, %219, %cst_56 {dimension_numbers = #tpu.dot_dimension_numbers<[1], [0], [0], [1], [0, 0, 1, 1], [], []>} : vector<2x64xf32>, vector<64x256xf32>, vector<2x256xf32> -> vector<2x256xf32>
    %221 = arith.addf %218, %220 : vector<2x256xf32>
    %222 = arith.negf %221 : vector<2x256xf32>
    %223 = math.exp %222 : vector<2x256xf32>
    %cst_57 = arith.constant 1.000000e+00 : f32
    %224 = vector.broadcast %cst_57 : f32 to vector<2x256xf32>
    %225 = arith.addf %224, %223 : vector<2x256xf32>
    %226 = arith.divf %224, %225 : vector<2x256xf32>
    %227 = math.tanh %221 : vector<2x256xf32>
    %228 = vector.extract_strided_slice %226 {offsets = [0, 64], sizes = [2, 64], strides = [1, 1]} : vector<2x256xf32> to vector<2x64xf32>
    %229 = arith.mulf %228, %213 : vector<2x64xf32>
    %230 = vector.extract_strided_slice %226 {offsets = [0, 0], sizes = [2, 64], strides = [1, 1]} : vector<2x256xf32> to vector<2x64xf32>
    %231 = vector.extract_strided_slice %227 {offsets = [0, 128], sizes = [2, 64], strides = [1, 1]} : vector<2x256xf32> to vector<2x64xf32>
    %232 = arith.mulf %230, %231 : vector<2x64xf32>
    %233 = arith.addf %229, %232 : vector<2x64xf32>
    %234 = vector.extract_strided_slice %226 {offsets = [0, 192], sizes = [2, 64], strides = [1, 1]} : vector<2x256xf32> to vector<2x64xf32>
    %235 = math.tanh %233 : vector<2x64xf32>
    %236 = arith.mulf %234, %235 : vector<2x64xf32>
    %237 = vector.extract_strided_slice %236 {offsets = [0, 32], sizes = [2, 32], strides = [1, 1]} : vector<2x64xf32> to vector<2x32xf32>
    %238 = vector.extract_strided_slice %95 {offsets = [14, 0], sizes = [2, 256], strides = [1, 1]} : vector<16x256xf32> to vector<2x256xf32>
    %c0_58 = arith.constant 0 : index
    %c0_59 = arith.constant 0 : index
    %239 = vector.load %arg12[%c0_58, %c0_59] : memref<64x256xf32, #tpu.memory_space<vmem>>, vector<64x256xf32>
    %cst_60 = arith.constant dense<0.000000e+00> : vector<2x256xf32>
    %240 = tpu.matmul %236, %239, %cst_60 {dimension_numbers = #tpu.dot_dimension_numbers<[1], [0], [0], [1], [0, 0, 1, 1], [], []>} : vector<2x64xf32>, vector<64x256xf32>, vector<2x256xf32> -> vector<2x256xf32>
    %241 = arith.addf %238, %240 : vector<2x256xf32>
    %242 = arith.negf %241 : vector<2x256xf32>
    %243 = math.exp %242 : vector<2x256xf32>
    %cst_61 = arith.constant 1.000000e+00 : f32
    %244 = vector.broadcast %cst_61 : f32 to vector<2x256xf32>
    %245 = arith.addf %244, %243 : vector<2x256xf32>
    %246 = arith.divf %244, %245 : vector<2x256xf32>
    %247 = math.tanh %241 : vector<2x256xf32>
    %248 = vector.extract_strided_slice %246 {offsets = [0, 64], sizes = [2, 64], strides = [1, 1]} : vector<2x256xf32> to vector<2x64xf32>
    %249 = arith.mulf %248, %233 : vector<2x64xf32>
    %250 = vector.extract_strided_slice %246 {offsets = [0, 0], sizes = [2, 64], strides = [1, 1]} : vector<2x256xf32> to vector<2x64xf32>
    %251 = vector.extract_strided_slice %247 {offsets = [0, 128], sizes = [2, 64], strides = [1, 1]} : vector<2x256xf32> to vector<2x64xf32>
    %252 = arith.mulf %250, %251 : vector<2x64xf32>
    %253 = arith.addf %249, %252 : vector<2x64xf32>
    %254 = vector.extract_strided_slice %246 {offsets = [0, 192], sizes = [2, 64], strides = [1, 1]} : vector<2x256xf32> to vector<2x64xf32>
    %255 = math.tanh %253 : vector<2x64xf32>
    %256 = arith.mulf %254, %255 : vector<2x64xf32>
    %257 = vector.extract_strided_slice %256 {offsets = [0, 0], sizes = [2, 32], strides = [1, 1]} : vector<2x64xf32> to vector<2x32xf32>
    %258 = vector.extract_strided_slice %253 {offsets = [0, 0], sizes = [2, 32], strides = [1, 1]} : vector<2x64xf32> to vector<2x32xf32>
    %259 = vector.extract_strided_slice %256 {offsets = [0, 32], sizes = [2, 32], strides = [1, 1]} : vector<2x64xf32> to vector<2x32xf32>
    %c0_62 = arith.constant 0 : index
    %c0_63 = arith.constant 0 : index
    %260 = vector.load %arg11[%c0_62, %c0_63] : memref<1x256xf32, #tpu.memory_space<vmem>>, vector<1x256xf32>
    %c0_64 = arith.constant 0 : index
    %c0_65 = arith.constant 0 : index
    %261 = vector.load %arg12[%c0_64, %c0_65] : memref<64x256xf32, #tpu.memory_space<vmem>>, vector<64x256xf32>
    %cst_66 = arith.constant dense<0.000000e+00> : vector<2x256xf32>
    %262 = tpu.matmul %256, %261, %cst_66 {dimension_numbers = #tpu.dot_dimension_numbers<[1], [0], [0], [1], [0, 0, 1, 1], [], []>} : vector<2x64xf32>, vector<64x256xf32>, vector<2x256xf32> -> vector<2x256xf32>
    %263 = vector.broadcast %260 : vector<1x256xf32> to vector<2x256xf32>
    %264 = arith.addf %263, %262 : vector<2x256xf32>
    %265 = arith.negf %264 : vector<2x256xf32>
    %266 = math.exp %265 : vector<2x256xf32>
    %cst_67 = arith.constant 1.000000e+00 : f32
    %267 = vector.broadcast %cst_67 : f32 to vector<2x256xf32>
    %268 = arith.addf %267, %266 : vector<2x256xf32>
    %269 = arith.divf %267, %268 : vector<2x256xf32>
    %270 = math.tanh %264 : vector<2x256xf32>
    %271 = vector.extract_strided_slice %269 {offsets = [0, 64], sizes = [2, 64], strides = [1, 1]} : vector<2x256xf32> to vector<2x64xf32>
    %272 = arith.mulf %271, %253 : vector<2x64xf32>
    %273 = vector.extract_strided_slice %269 {offsets = [0, 0], sizes = [2, 64], strides = [1, 1]} : vector<2x256xf32> to vector<2x64xf32>
    %274 = vector.extract_strided_slice %270 {offsets = [0, 128], sizes = [2, 64], strides = [1, 1]} : vector<2x256xf32> to vector<2x64xf32>
    %275 = arith.mulf %273, %274 : vector<2x64xf32>
    %276 = arith.addf %272, %275 : vector<2x64xf32>
    %277 = vector.extract_strided_slice %269 {offsets = [0, 192], sizes = [2, 64], strides = [1, 1]} : vector<2x256xf32> to vector<2x64xf32>
    %278 = math.tanh %276 : vector<2x64xf32>
    %279 = arith.mulf %277, %278 : vector<2x64xf32>
    %280 = vector.extract_strided_slice %279 {offsets = [0, 32], sizes = [2, 32], strides = [1, 1]} : vector<2x64xf32> to vector<2x32xf32>
    %281 = vector.extract_strided_slice %276 {offsets = [0, 32], sizes = [2, 32], strides = [1, 1]} : vector<2x64xf32> to vector<2x32xf32>
    %282 = vector.extract_strided_slice %279 {offsets = [0, 32], sizes = [2, 32], strides = [1, 1]} : vector<2x64xf32> to vector<2x32xf32>
    %283 = tpu.concatenate %137, %157, %177, %197, %217, %237, %259, %282 in 0 : vector<2x32xf32>, vector<2x32xf32>, vector<2x32xf32>, vector<2x32xf32>, vector<2x32xf32>, vector<2x32xf32>, vector<2x32xf32>, vector<2x32xf32> -> vector<16x32xf32>
    %cst_68 = arith.constant 0.000000e+00 : f32
    %284 = vector.broadcast %cst_68 : f32 to vector<16x32xf32>
    %285 = arith.maximumf %283, %284 : vector<16x32xf32>
    %c0_69 = arith.constant 0 : index
    %c0_70 = arith.constant 0 : index
    %286 = vector.load %arg13[%c0_69, %c0_70] : memref<32x24xf32, #tpu.memory_space<vmem>>, vector<32x24xf32>
    %cst_71 = arith.constant dense<0.000000e+00> : vector<16x24xf32>
    %287 = tpu.matmul %285, %286, %cst_71 {dimension_numbers = #tpu.dot_dimension_numbers<[1], [0], [0], [1], [0, 0, 1, 1], [], []>} : vector<16x32xf32>, vector<32x24xf32>, vector<16x24xf32> -> vector<16x24xf32>
    %c0_72 = arith.constant 0 : index
    %c0_73 = arith.constant 0 : index
    %288 = vector.load %arg14[%c0_72, %c0_73] : memref<1x24xf32, #tpu.memory_space<vmem>>, vector<1x24xf32>
    %289 = vector.broadcast %288 : vector<1x24xf32> to vector<16x24xf32>
    %290 = arith.addf %287, %289 : vector<16x24xf32>
    %cst_74 = arith.constant 0.000000e+00 : f32
    %291 = vector.broadcast %cst_74 : f32 to vector<16x24xf32>
    %292 = arith.maximumf %290, %291 : vector<16x24xf32>
    %c0_75 = arith.constant 0 : index
    %c0_76 = arith.constant 0 : index
    %293 = vector.load %arg15[%c0_75, %c0_76] : memref<24x4xf32, #tpu.memory_space<vmem>>, vector<24x4xf32>
    %cst_77 = arith.constant dense<0.000000e+00> : vector<16x4xf32>
    %294 = tpu.matmul %292, %293, %cst_77 {dimension_numbers = #tpu.dot_dimension_numbers<[1], [0], [0], [1], [0, 0, 1, 1], [], []>} : vector<16x24xf32>, vector<24x4xf32>, vector<16x4xf32> -> vector<16x4xf32>
    %c0_78 = arith.constant 0 : index
    %c0_79 = arith.constant 0 : index
    %295 = vector.load %arg16[%c0_78, %c0_79] : memref<1x4xf32, #tpu.memory_space<vmem>>, vector<1x4xf32>
    %296 = vector.broadcast %295 : vector<1x4xf32> to vector<16x4xf32>
    %297 = arith.addf %294, %296 : vector<16x4xf32>
    %c0_80 = arith.constant 0 : index
    %c0_81 = arith.constant 0 : index
    %298 = vector.load %arg17[%c0_80, %c0_81] : memref<16x16xf32, #tpu.memory_space<vmem>>, vector<16x16xf32>
    %cst_82 = arith.constant dense<0.000000e+00> : vector<16x4xf32>
    %299 = tpu.matmul %298, %297, %cst_82 {dimension_numbers = #tpu.dot_dimension_numbers<[1], [0], [0], [1], [0, 0, 1, 1], [], []>} : vector<16x16xf32>, vector<16x4xf32>, vector<16x4xf32> -> vector<16x4xf32>
    %c0_83 = arith.constant 0 : index
    %c0_84 = arith.constant 0 : index
    %300 = vector.load %arg18[%c0_83, %c0_84] : memref<16x128xf32, #tpu.memory_space<vmem>>, vector<16x4xf32>
    tpu.vector_store %arg18[%c0_83, %c0_84], %299 {strides = array<i32>} : memref<16x128xf32, #tpu.memory_space<vmem>>, vector<16x4xf32>,
    %c0_85 = arith.constant 0 : index
    %c8 = arith.constant 8 : index
    %301 = vector.load %arg18[%c0_85, %c8] : memref<16x128xf32, #tpu.memory_space<vmem>>, vector<2x32xf32>
    tpu.vector_store %arg18[%c0_85, %c8], %257 {strides = array<i32>} : memref<16x128xf32, #tpu.memory_space<vmem>>, vector<2x32xf32>,
    %c2 = arith.constant 2 : index
    %c8_86 = arith.constant 8 : index
    %302 = vector.load %arg18[%c2, %c8_86] : memref<16x128xf32, #tpu.memory_space<vmem>>, vector<2x32xf32>
    tpu.vector_store %arg18[%c2, %c8_86], %280 {strides = array<i32>} : memref<16x128xf32, #tpu.memory_space<vmem>>, vector<2x32xf32>,
    %c0_87 = arith.constant 0 : index
    %c40 = arith.constant 40 : index
    %303 = vector.load %arg18[%c0_87, %c40] : memref<16x128xf32, #tpu.memory_space<vmem>>, vector<2x32xf32>
    tpu.vector_store %arg18[%c0_87, %c40], %258 {strides = array<i32>} : memref<16x128xf32, #tpu.memory_space<vmem>>, vector<2x32xf32>,
    %c2_88 = arith.constant 2 : index
    %c40_89 = arith.constant 40 : index
    %304 = vector.load %arg18[%c2_88, %c40_89] : memref<16x128xf32, #tpu.memory_space<vmem>>, vector<2x32xf32>
    tpu.vector_store %arg18[%c2_88, %c40_89], %281 {strides = array<i32>} : memref<16x128xf32, #tpu.memory_space<vmem>>, vector<2x32xf32>,
    return
  }
}

</mosaic_0001>

<bundles_post_ra>
// kernel: eq.24
= control target key start
LH: loop header
LB: loop body
LE: loop exit
PB: predicated region body
PF: predicated region fallthrough
CT: control target
= control target key end

     0   :  { %s20_s8 = smov 3  ;;  %s74_s9 = smov 112   ;;  %vm4_vm0 = vcmask 130048   ;;  %vm10_vm1 = vcmask 1048448   ;;  %vm17_vm2 = vcmask 917248   ;;  %vm24_vm3 = vcmask 786048   ;;  %s118_s0 = inlined_call_operand.vmem [shape: s32[15,16], index: 0, kind: input, shape index: {}]   ;;  %s119_s1 = inlined_call_operand.vmem [shape: s32[240], index: 1, kind: output, shape index: {}]  }
   0x1   :  { %v60_v0 = vld [vmem:[%s118_s0 + $0x7] sm:$0x1]   ;;  %v62_v1 = vld [vmem:[%s118_s0 + $0x5] ss:$8 sm:%s20_s8]   ;;  %s13_s12 = smov 3  ;;  %s75_s13 = smov 80  }
   0x2   :  { %8 = vrot.lane.b32.xlu0 %v60_v0, %s74_s9  ;;  %22 = vrot.lane.b32.xlu1 %v62_v1, %s75_s13  ;;  %v61_v2 = vld [vmem:[%s118_s0 + $0x6] ss:$8 sm:%s13_s12]   ;;  %s27_s16 = smov 3  ;;  %s34_s19 = smov 3  ;;  %vm31_vm4 = vcmask 654848   ;;  %vm38_vm5 = vcmask 523648  }
   0x3   :  { %v63_v3 = vld [vmem:[%s118_s0 + $0x4] ss:$8 sm:%s27_s16]   ;;  %s41_s20 = smov 3  ;;  %s76_s21 = smov 96   ;;  %v64_v4 = vld [vmem:[%s118_s0 + $0x3] ss:$8 sm:%s34_s19]  }
   0x4   :  { %s77_s22 = smov 64   ;;  %s2_s25 = smov 3  ;;  %v65_v5 = vld [vmem:[%s118_s0 + $0x2] ss:$8 sm:%s41_s20]   ;;  %vm45_vm6 = vcmask 392448   ;;  %vm52_vm7 = vcmask 261248  }
   0x5   :  { %s48_s28 = smov 3  ;;  %v3_v6 = vld [vmem:[%s118_s0] ss:$8 sm:%s2_s25]   ;;  %s78_s2 = smov 48  }
   0x6   :  { %15 = vrot.lane.b32.xlu0 %v61_v2, %s76_s21  ;;  %29 = vrot.lane.b32.xlu1 %v63_v3, %s77_s22  ;;  %5 = vst.msk [vmem:[#allocation0] sm:$0x3] %vm4_vm0, %v3_v6   ;;  %s79_s3 = smov 32   ;;  %v66_v7 = vld [vmem:[%s118_s0 + $0x1] ss:$8 sm:%s48_s28]   ;;  %s80_s0 = smov 16  }
   0xa   :  { %36 = vrot.lane.b32.xlu0 %v64_v4, %s78_s2  ;;  %43 = vrot.lane.b32.xlu1 %v65_v5, %s79_s3 }
   0xe   :  { %50 = vrot.lane.b32.xlu0 %v66_v7, %s80_s0 }
  0x74   :  { %v9_v8 = vpop.permute.xlu0 %8   ;;  %v23_v9 = vpop.permute.xlu1 %22  }
  0x75   :  { %11 = vst.msk [vmem:[#allocation0] sm:$0x1] %vm10_vm1, %v9_v8  }
  0x78   :  { %v16_v10 = vpop.permute.xlu0 %15   ;;  %v30_v11 = vpop.permute.xlu1 %29  }
  0x79   :  { %18 = vst.msk [vmem:[#allocation0] sm:$0x3] %vm17_vm2, %v16_v10  }
  0x7a   :  { %25 = vst.msk [vmem:[#allocation0] sm:$0x3] %vm24_vm3, %v23_v9  }
  0x7b   :  { %32 = vst.msk [vmem:[#allocation0] sm:$0x3] %vm31_vm4, %v30_v11  }
  0x7c   :  { %v37_v12 = vpop.permute.xlu0 %36   ;;  %v44_v13 = vpop.permute.xlu1 %43  }
  0x7d   :  { %39 = vst.msk [vmem:[#allocation0] sm:$0x3] %vm38_vm5, %v37_v12  }
  0x7e   :  { %46 = vst.msk [vmem:[#allocation0] sm:$0x3] %vm45_vm6, %v44_v13  }
  0x80   :  { %v51_v14 = vpop.permute.xlu0 %50  }
  0x81   :  { %53 = vst.msk [vmem:[#allocation0] sm:$0x3] %vm52_vm7, %v51_v14  }
  0x88   :  { %v57_v15 = vld [vmem:[#allocation0] sm:$0x3] }
  0x89   :  { %59 = vst [vmem:[%s119_s1] sm:$0x3] %v57_v15 }

// kernel: man_forward.1
= control target key start
LH: loop header
LB: loop body
LE: loop exit
PB: predicated region body
PF: predicated region fallthrough
CT: control target
= control target key end

     0   :  { %vm75_vm0 = vcmask 457728   ;;  %v2770_v33 = vmov 0.0   ;;  %v2771_v34 = vmov 0.0|0.0   ;;  %vm183_vm1 = vcmask 392192   ;;  %s2774_s22 = smov 119   ;;  %s2776_s23 = smov 120   ;;  %s3553_s1 = inlined_call_operand.vmem [shape: f32[56,48], index: 1, kind: input, shape index: {}]   ;;  %s3554_s0 = inlined_call_operand.vmem [shape: f32[16,56], index: 0, kind: input, shape index: {}]   ;;  %s3555_s3 = inlined_call_operand.vmem [shape: f32[48,240], index: 3, kind: input, shape index: {}]   ;;  %s3556_s5 = inlined_call_operand.vmem [shape: f32[48,240], index: 5, kind: input, shape index: {}]   ;;  %s3557_s9 = inlined_call_operand.vmem [shape: f32[240,16], index: 9, kind: input, shape index: {}]   ;;  %s3558_s2 = inlined_call_operand.vmem [shape: f32[1,48], index: 2, kind: input, shape index: {}]   ;;  %s3559_s7 = inlined_call_operand.vmem [shape: f32[48,16], index: 7, kind: input, shape index: {}]   ;;  %s3560_s4 = inlined_call_operand.vmem [shape: f32[1,240], index: 4, kind: input, shape index: {}]   ;;  %s3561_s6 = inlined_call_operand.vmem [shape: f32[1,240], index: 6, kind: input, shape index: {}]   ;;  %s3562_s8 = inlined_call_operand.vmem [shape: f32[1,16], index: 8, kind: input, shape index: {}]   ;;  %s3563_s10 = inlined_call_operand.vmem [shape: f32[48,256], index: 10, kind: input, shape index: {}]   ;;  %s3564_s11 = inlined_call_operand.vmem [shape: f32[1,256], index: 11, kind: input, shape index: {}]   ;;  %s3565_s12 = inlined_call_operand.vmem [shape: f32[64,256], index: 12, kind: input, shape index: {}]   ;;  %s3566_s13 = inlined_call_operand.vmem [shape: f32[32,24], index: 13, kind: input, shape index: {}]   ;;  %s3567_s15 = inlined_call_operand.vmem [shape: f32[24,4], index: 15, kind: input, shape index: {}]   ;;  %s3568_s14 = inlined_call_operand.vmem [shape: f32[1,24], index: 14, kind: input, shape index: {}]   ;;  %s3569_s17 = inlined_call_operand.vmem [shape: f32[16,16], index: 17, kind: input, shape index: {}]   ;;  %s3570_s16 = inlined_call_operand.vmem [shape: f32[1,4], index: 16, kind: input, shape index: {}]   ;;  %s3571_s18 = inlined_call_operand.vmem [shape: f32[16,128], index: 18, kind: output, shape index: {}]  }
   0x1   :  { %3575 = sst [smem:[#allocation2_spill]] %s3553_s1  ;;  %v268_v30 = vld [vmem:[%s3556_s5 + $0x8] sm:$0xff]  ;;  %v270_v31 = vld [vmem:[%s3556_s5 + $0x18] sm:$0xff]  ;;  %254 = vmatprep.mubr.f32.mxu1 %v2770_v33  ;;  %v372_v35 = vld [vmem:[%s3557_s9] sm:$0xff]  ;;  %vm402_vm2 = vcmask 916480   ;;  %s2777_s24 = smov 123  }
   0x2   :  { %3576 = sst [smem:[#allocation3_spill]] %s3554_s0  ;;  %s3578_s29 = sld [smem:[#allocation2_spill]]  ;;  %v2354_v32 = vpack.c.bf16 %v270_v31, %v268_v30  ;;  %v373_v36 = vld [vmem:[%s3557_s9 + $0x8] sm:$0xff]  ;;  %v374_v37 = vld [vmem:[%s3557_s9 + $0x10] sm:$0xff]  ;;  %v375_v39 = vld [vmem:[%s3557_s9 + $0x18] sm:$0xff]  ;;  %vm834_vm7 = vcmask 130048  }
   0x3   :  { %3577 = sst [smem:[#allocation4_spill]] %s3555_s3  ;;  %s3579_s27 = sld [smem:[#allocation3_spill]]  ;;  %v2367_v38 = vpack.c.bf16 %v373_v36, %v372_v35  ;;  %v2370_v40 = vpack.c.bf16 %v375_v39, %v374_v37  ;;  %v376_v41 = vld [vmem:[%s3557_s9 + $0x20] sm:$0xff]  ;;  %v377_v42 = vld [vmem:[%s3557_s9 + $0x28] sm:$0xff]  ;;  %v378_v44 = vld [vmem:[%s3557_s9 + $0x30] sm:$0xff]  ;;  %vm837_vm8 = vcmask 261120  }
   0x4   :  { %s3580_s1 = sld [smem:[#allocation4_spill]]  ;;  %v2373_v43 = vpack.c.bf16 %v377_v42, %v376_v41  ;;  %v379_v45 = vld [vmem:[%s3557_s9 + $0x38] sm:$0xff]  ;;  %v380_v47 = vld [vmem:[%s3557_s9 + $0x40] sm:$0xff]  ;;  %v381_v48 = vld [vmem:[%s3557_s9 + $0x48] sm:$0xff]  ;;  %s2775_s3 = smov 122   ;;  %vm997_vm9 = vcmask 523264  }
   0x5   :  { %v2376_v46 = vpack.c.bf16 %v379_v45, %v378_v44  ;;  %v2379_v49 = vpack.c.bf16 %v381_v48, %v380_v47  ;;  %v382_v50 = vld [vmem:[%s3557_s9 + $0x50] sm:$0xff]  ;;  %v383_v51 = vld [vmem:[%s3557_s9 + $0x58] sm:$0xff]  ;;  %v384_v53 = vld [vmem:[%s3557_s9 + $0x60] sm:$0xff]  ;;  %s2778_s25 = smov 116   ;;  %s2779_s26 = smov 121   ;;  %vm1879_vm10 = vcmask 1041408  }
   0x6   :  { %v2382_v52 = vpack.c.bf16 %v383_v51, %v382_v50  ;;  %v385_v54 = vld [vmem:[%s3557_s9 + $0x68] sm:$0xff]  ;;  %v386_v56 = vld [vmem:[%s3557_s9 + $0x70] sm:$0xff]  ;;  %v387_v57 = vld [vmem:[%s3557_s9 + $0x78] sm:$0xff]  ;;  %s2782_s28 = smov 126   ;;  %s2786_s30 = smov 32   ;;  %vm1881_vm11 = vcmask 1043456  }
   0x7   :  { %v2385_v55 = vpack.c.bf16 %v385_v54, %v384_v53  ;;  %v2388_v58 = vpack.c.bf16 %v387_v57, %v386_v56  ;;  %v388_v59 = vld [vmem:[%s3557_s9 + $0x80] sm:$0xff]  ;;  %v389_v60 = vld [vmem:[%s3557_s9 + $0x88] sm:$0xff]  ;;  %v390_v62 = vld [vmem:[%s3557_s9 + $0x90] sm:$0xff]  ;;  %vm1883_vm12 = vcmask 1045504   ;;  %s2789_s19 = smov 104   ;;  %vm1998_vm13 = vcmask 195584  }
   0x8   :  { %v61_v0 = vld [vmem:[%s3578_s29] sm:$0xff]  ;;  %v62_v1 = vld [vmem:[%s3578_s29 + $0x8] sm:$0xff]  ;;  %v63_v2 = vld [vmem:[%s3578_s29 + $0x10] sm:$0xff]  ;;  %v2391_v61 = vpack.c.bf16 %v389_v60, %v388_v59  ;;  %vm2163_vm14 = vcmask 31744   ;;  %vm2169_vm15 = vcmask 326726  }
   0x9   :  { %v2330_v3 = vpack.c.bf16 %v62_v1, %v61_v0  ;;  %v64_v4 = vld [vmem:[%s3578_s29 + $0x18] sm:$0xff]  ;;  %v65_v6 = vld [vmem:[%s3578_s29 + $0x20] sm:$0xff]  ;;  %v66_v7 = vld [vmem:[%s3578_s29 + $0x28] sm:$0xff] }
   0xa   :  { %v2334_v5 = vpack.c.bf16 %v64_v4, %v63_v2  ;;  %v59_v8 = vld [vmem:[%s3579_s27] sm:$0xff]  ;;  %v160_v9 = vld [vmem:[%s3580_s1 + $0x8] sm:$0xff]  ;;  %v162_v10 = vld [vmem:[%s3580_s1 + $0x18] sm:$0xff]  ;;  %v2338_v16 = vpack.c.bf16 %v66_v7, %v65_v6 }
   0xb   :  { %2331 = vmatprep.subr.bf16.mxu0 %v2330_v3  ;;  %2285 = vmatprep.mubr.msk.f32.mxu0 %vm75_vm0, %v59_v8  ;;  %v159_v11 = vld [vmem:[%s3580_s1] sm:$0xff]  ;;  %v2342_v12 = vpack.c.bf16 %v162_v10, %v160_v9  ;;  %v161_v13 = vld [vmem:[%s3580_s1 + $0x10] sm:$0xff]  ;;  %v164_v14 = vld [vmem:[%s3580_s1 + $0x28] sm:$0xff] }
   0xc   :  { %2333 = vmatpush3.bf16.msra.mxu0 %v2330_v3  ;;  %v166_v15 = vld [vmem:[%s3580_s1 + $0x38] sm:$0xff]  ;;  %v2344_v17 = vpack.c.bf16 %v161_v13, %v159_v11  ;;  %v163_v19 = vld [vmem:[%s3580_s1 + $0x20] sm:$0xff]  ;;  %v165_v20 = vld [vmem:[%s3580_s1 + $0x30] sm:$0xff] }
   0xd   :  { %2335 = vmatprep.subr.bf16.mxu0 %v2334_v5  ;;  %v2346_v18 = vpack.c.bf16 %v166_v15, %v164_v14  ;;  %2343 = vmatprep.subr.bf16.mxu1 %v2342_v12  ;;  %v2348_v21 = vpack.c.bf16 %v165_v20, %v163_v19  ;;  %v67_v22 = vld [vmem:[%s3578_s29 + $0x30] sm:$0xff]  ;;  %v60_v23 = vld [vmem:[%s3579_s27 + $0x8] sm:$0xff]  ;;  %v170_v25 = vld [vmem:[%s3580_s1 + $0x58] sm:$0xff]  ;;  %s2780_s29 = smov 127  }
   0xe   :  { %2345 = vmatpush1.bf16.msra.mxu1 %v2344_v17  ;;  %v168_v24 = vld [vmem:[%s3580_s1 + $0x48] sm:$0xff]  ;;  %v167_v27 = vld [vmem:[%s3580_s1 + $0x40] sm:$0xff]  ;;  %v169_v28 = vld [vmem:[%s3580_s1 + $0x50] sm:$0xff] }
   0xf   :  { %2347 = vmatprep.subr.bf16.mxu1 %v2346_v18  ;;  %v2350_v26 = vpack.c.bf16 %v170_v25, %v168_v24  ;;  %v2352_v29 = vpack.c.bf16 %v169_v28, %v167_v27  ;;  %v391_v63 = vld [vmem:[%s3557_s9 + $0x98] sm:$0xff]  ;;  %v392_v1 = vld [vmem:[%s3557_s9 + $0xa0] sm:$0xff]  ;;  %v393_v2 = vld [vmem:[%s3557_s9 + $0xa8] sm:$0xff] }
  0x10   :  { %2337 = vmatpush3.bf16.msra.mxu0 %v2334_v5  ;;  %v2394_v0 = vpack.c.bf16 %v391_v63, %v390_v62  ;;  %v2397_v3 = vpack.c.bf16 %v393_v2, %v392_v1  ;;  %v2191_v4 = vld [vmem:[%s3558_s2] ss:$0 sm:$0xff]  ;;  %v269_v7 = vld [vmem:[%s3556_s5 + $0x10] sm:$0xff]  ;;  %v272_v9 = vld [vmem:[%s3556_s5 + $0x28] sm:$0xff]  ;;  %s2785_s2 = smov 16  }
  0x11   :  { %2339 = vmatprep.subr.bf16.mxu0 %v2338_v16  ;;  %v267_v6 = vld [vmem:[%s3556_s5] sm:$0xff]  ;;  %v274_v10 = vld [vmem:[%s3556_s5 + $0x38] sm:$0xff]  ;;  %v273_v17 = vld [vmem:[%s3556_s5 + $0x30] sm:$0xff] }
  0x12   :  { %2349 = vmatpush1.bf16.msra.mxu1 %v2348_v21  ;;  %v2356_v12 = vpack.c.bf16 %v269_v7, %v267_v6  ;;  %v2358_v15 = vpack.c.bf16 %v274_v10, %v272_v9  ;;  %v276_v18 = vld [vmem:[%s3556_s5 + $0x48] sm:$0xff]  ;;  %v278_v19 = vld [vmem:[%s3556_s5 + $0x58] sm:$0xff]  ;;  %v277_v24 = vld [vmem:[%s3556_s5 + $0x50] sm:$0xff] }
  0x13   :  { %2351 = vmatprep.subr.bf16.mxu1 %v2350_v26  ;;  %v694_v25 = vld [vmem:[%s3559_s7] sm:$0xff]  ;;  %v695_v26 = vld [vmem:[%s3559_s7 + $0x8] sm:$0xff]  ;;  %v697_v30 = vld [vmem:[%s3559_s7 + $0x18] sm:$0xff] }
  0x14   :  { %2341 = vmatpush3.bf16.msra.mxu0 %v2338_v16  ;;  %v271_v16 = vld [vmem:[%s3556_s5 + $0x20] sm:$0xff]  ;;  %v2411_v28 = vpack.c.bf16 %v695_v26, %v694_v25  ;;  %v699_v35 = vld [vmem:[%s3559_s7 + $0x28] sm:$0xff]  ;;  %v394_v37 = vld [vmem:[%s3557_s9 + $0xb0] sm:$0xff] }
  0x15   :  { %2283 = vmatprep.subr.mxu0 %v67_v22  ;;  %v2360_v20 = vpack.c.bf16 %v273_v17, %v271_v16  ;;  %v397_v41 = vld [vmem:[%s3557_s9 + $0xc8] sm:$0xff]  ;;  %v399_v44 = vld [vmem:[%s3557_s9 + $0xd8] sm:$0xff]  ;;  %v279_v57 = vld [vmem:[%s3561_s6] sm:$0x3] }
  0x16   :  { %2353 = vmatpush1.bf16.msra.mxu1 %v2352_v29  ;;  %v696_v29 = vld [vmem:[%s3559_s7 + $0x10] sm:$0xff]  ;;  %v401_v47 = vld [vmem:[%s3557_s9 + $0xe8] sm:$0xff] }
  0x17   :  { %2355 = vmatprep.subr.bf16.mxu1 %v2354_v32  ;;  %v2415_v31 = vpack.c.bf16 %v697_v30, %v696_v29  ;;  %v698_v32 = vld [vmem:[%s3559_s7 + $0x20] sm:$0xff] }
  0x18   :  { %2284 = vmatpush3.msra.mxu0 %v67_v22  ;;  %v2362_v22 = vpack.c.bf16 %v278_v19, %v276_v18  ;;  %v2419_v36 = vpack.c.bf16 %v699_v35, %v698_v32 }
  0x19   :  { %2286 = vmatmul.mubr.msk.f32.vlgmr.msra.gmra.mrb[0].mxu0 %vm75_vm0, %v60_v23  ;;  %2366 = vmatprep.subr.bf16.mxu0 %v2771_v34  ;;  %v275_v23 = vld [vmem:[%s3556_s5 + $0x40] sm:$0xff]  ;;  %vm2174_vm0 = vcmask 320576  }
  0x1a   :  { %2368 = vmatpush1.bf16.msra.mxu0 %v2367_v38  ;;  %v2364_v27 = vpack.c.bf16 %v277_v24, %v275_v23  ;;  %v395_v38 = vld [vmem:[%s3557_s9 + $0xb8] sm:$0xff] }
  0x1b   :  { %2369 = vmatprep.subr.bf16.mxu0 %v2771_v34  ;;  %v2400_v39 = vpack.c.bf16 %v395_v38, %v394_v37 }
  0x1e   :  { %2371 = vmatpush1.bf16.msra.mxu0 %v2370_v40  ;;  %v396_v40 = vld [vmem:[%s3557_s9 + $0xc0] sm:$0xff] }
  0x1f   :  { %2372 = vmatprep.subr.bf16.mxu0 %v2771_v34  ;;  %v2403_v42 = vpack.c.bf16 %v397_v41, %v396_v40 }
  0x22   :  { %2374 = vmatpush1.bf16.msra.mxu0 %v2373_v43  ;;  %v398_v43 = vld [vmem:[%s3557_s9 + $0xd0] sm:$0xff] }
  0x23   :  { %2375 = vmatprep.subr.bf16.mxu0 %v2771_v34  ;;  %v2406_v45 = vpack.c.bf16 %v399_v44, %v398_v43 }
  0x26   :  { %2377 = vmatpush1.bf16.msra.mxu0 %v2376_v46  ;;  %v400_v46 = vld [vmem:[%s3557_s9 + $0xe0] sm:$0xff]  ;;  %s2773_s9 = smov 124  }
  0x27   :  { %2378 = vmatprep.subr.bf16.mxu0 %v2771_v34  ;;  %v2409_v48 = vpack.c.bf16 %v401_v47, %v400_v46 }
  0x2a   :  { %2380 = vmatpush1.bf16.msra.mxu0 %v2379_v49  ;;  %v173_v49 = vlaneseq }
  0x2b   :  { %2381 = vmatprep.subr.bf16.mxu0 %v2771_v34 }
  0x2c   :  { %v174_v51 = vshrl.u32 %v173_v49, 7 }
  0x2e   :  { %2383 = vmatpush1.bf16.msra.mxu0 %v2382_v52  ;;  %v3134_v54 = vsub.s32 0, %v174_v51  ;;  %v3139_v56 = vsub.s32 1, %v174_v51 }
  0x2f   :  { %2384 = vmatprep.subr.bf16.mxu0 %v2771_v34 }
  0x30   :  { %v284_v59 = vrot.slane %v279_v57, %v3134_v54 }
  0x32   :  { %2386 = vmatpush1.bf16.msra.mxu0 %v2385_v55 }
  0x33   :  { %2387 = vmatprep.subr.bf16.mxu0 %v2771_v34 }
  0x36   :  { %2389 = vmatpush1.bf16.msra.mxu0 %v2388_v58 }
  0x37   :  { %2390 = vmatprep.subr.bf16.mxu0 %v2771_v34 }
  0x3a   :  { %2392 = vmatpush1.bf16.msra.mxu0 %v2391_v61  ;;  %v288_v61 = vrot.slane %v279_v57, %v3139_v56 }
  0x3b   :  { %2393 = vmatprep.subr.bf16.mxu0 %v2771_v34 }
  0x3e   :  { %2395 = vmatpush1.bf16.msra.mxu0 %v2394_v0 }
  0x3f   :  { %2396 = vmatprep.subr.bf16.mxu0 %v2771_v34 }
  0x42   :  { %2398 = vmatpush1.bf16.msra.mxu0 %v2397_v3 }
  0x43   :  { %2399 = vmatprep.subr.bf16.mxu0 %v2771_v34 }
  0x46   :  { %2401 = vmatpush1.bf16.msra.mxu0 %v2400_v39 }
  0x47   :  { %2402 = vmatprep.subr.bf16.mxu0 %v2771_v34 }
  0x4a   :  { %2404 = vmatpush1.bf16.msra.mxu0 %v2403_v42 }
  0x4b   :  { %2405 = vmatprep.subr.bf16.mxu0 %v2771_v34 }
  0x4e   :  { %2407 = vmatpush1.bf16.msra.mxu0 %v2406_v45 }
  0x4f   :  { %2408 = vmatprep.subr.bf16.mxu0 %v2771_v34  ;;  %v171_v34 = vld [vmem:[%s3560_s4] sm:$0x3] }
  0x50   :  { %v176_v58 = vrot.slane %v171_v34, %v3134_v54  ;;  %v180_v60 = vrot.slane %v171_v34, %v3139_v56 }
  0x52   :  { %2410 = vmatpush1.bf16.msra.mxu0 %v2409_v48 }
  0xec   :  { %v2287_v5 = vpop.f32.mrb[0].mxu0 }
  0xed   :  { %v148_v8 = vpop.f32.mrb[1].mxu0  ;;  %v154_v13 = vadd.f32 %v2287_v5, %v2191_v4 }
  0xee   :  { %v149_v11 = vadd.f32 %v2191_v4, %v148_v8 }
  0xef   :  { %v3068_v21 = vmax.f32 %v154_v13, 0.0 }
  0xf0   :  { %v3051_v14 = vmax.f32 %v149_v11, 0.0 }
  0xf2   :  { %2194 = vmatmul.mubr.msk.f32.vlgmr.msra.gmra.mrb[0].mxu1 %vm183_vm1, %v3051_v14 }
  0xf3   :  { %2357 = vmatpush1.bf16.msra.mxu1 %v2356_v12  ;;  %260 = vmatprep.mubr.f32.mxu1 %v2770_v33 }
  0xf4   :  { %2359 = vmatprep.subr.bf16.mxu1 %v2358_v15  ;;  %v3151_v15 = vld [vmem:[%s3562_s8] ss:$0 sm:$0xff]  ;;  %s2772_s8 = smov 125  }
  0xf6   :  { %2195 = vmatmul.mubr.msk.f32.gmra.mrb[2].mxu1 %vm183_vm1, %v3068_v21 }
  0xf7   :  { %2361 = vmatpush1.bf16.msra.mxu1 %v2360_v20  ;;  %355 = vmatprep.mubr.f32.mxu1 %v2770_v33 }
  0xf8   :  { %2363 = vmatprep.subr.bf16.mxu1 %v2362_v22 }
  0xfb   :  { %2365 = vmatpush1.bf16.msra.mxu1 %v2364_v27 }
  0xfc   :  { %2412 = vmatprep.subr.bf16.mxu1 %v2411_v28 }
  0xfe   :  { %2196 = vmatmul.mubr.msk.f32.vlgmr.msra.gmra.mrb[4].mxu1 %vm183_vm1, %v3051_v14 }
  0xff   :  { %2414 = vmatpush3.bf16.msra.mxu1 %v2411_v28  ;;  %361 = vmatprep.mubr.f32.mxu1 %v2770_v33 }
 0x100   :  { %2416 = vmatprep.subr.bf16.mxu1 %v2415_v31 }
 0x102   :  { %2197 = vmatmul.mubr.msk.f32.gmra.mrb[6].mxu1 %vm183_vm1, %v3068_v21 }
 0x103   :  { %2418 = vmatpush3.bf16.msra.mxu1 %v2415_v31  ;;  %2300 = vmatprep.mubr.msk.f32.mxu1 %vm183_vm1, %v3051_v14 }
 0x104   :  { %2420 = vmatprep.subr.bf16.mxu1 %v2419_v36 }
 0x107   :  { %2422 = vmatpush3.bf16.msra.mxu1 %v2419_v36 }
 0x10a   :  { %2301 = vmatmul.mubr.msk.f32.vlgmr.msra.gmra.mrb[8].mxu1 %vm183_vm1, %v3068_v21 }
 0x10b   :  { %936 = vmatprep.mubr.f32.mxu1 %v2770_v33 }
 0x1c5   :  { %v256_v50 = vpop.f32.mrb[0].mxu1 }
 0x1c6   :  { %v258_v52 = vpop.f32.mrb[1].mxu1  ;;  %v257_v63 = vadd.f32 %v256_v50, %v176_v58 }
 0x1c7   :  { %v259_v2 = vadd.f32 %v258_v52, %v180_v60 }
 0x1c9   :  { %v262_v53 = vpop.f32.mrb[2].mxu1 }
 0x1ca   :  { %v264_v55 = vpop.f32.mrb[3].mxu1  ;;  %v263_v7 = vadd.f32 %v262_v53, %v176_v58 }
 0x1cb   :  { %v265_v10 = vadd.f32 %v264_v55, %v180_v60 }
 0x1d1   :  { %v357_v62 = vpop.f32.mrb[4].mxu1 }
 0x1d2   :  { %v358_v0 = vadd.f32 %v357_v62, %v284_v59  ;;  %v359_v1 = vpop.f32.mrb[5].mxu1 }
 0x1d3   :  { %v360_v3 = vadd.f32 %v359_v1, %v288_v61  ;;  %v2781_v1 = vmov 6  }
 0x1d4   :  { %v368_v4 = vmul.f32 %v358_v0, %v257_v63  ;;  %2600 = vset.pattern.permute.xlu0 %v2781_v1 }
 0x1d5   :  { %v369_v5 = vmul.f32 %v360_v3, %v259_v2  ;;  %v363_v6 = vpop.f32.mrb[6].mxu1 }
 0x1d6   :  { %v364_v8 = vadd.f32 %v363_v6, %v284_v59  ;;  %v365_v9 = vpop.f32.mrb[7].mxu1 }
 0x1d7   :  { %v366_v11 = vadd.f32 %v365_v9, %v288_v61  ;;  %2198 = vmatprep.mubr.msk.f32.mxu0 %vm402_vm2, %v369_v5 }
 0x1d8   :  { %v370_v12 = vmul.f32 %v364_v8, %v263_v7  ;;  %474 = vmatmul.mubr.f32.vlgmr.msra.gmra.mrb[2].mxu0 %v368_v4  ;;  %v2783_v4 = vmov 3  }
 0x1d9   :  { %v371_v13 = vmul.f32 %v366_v11, %v265_v10  ;;  %2601 = vset.pattern.permute.xlu1 %v2783_v4 }
 0x1db   :  { %2199 = vmatprep.mubr.msk.f32.mxu0 %vm402_vm2, %v371_v13  ;;  %vm2185_vm2 = vcmask 582976  }
 0x1dc   :  { %479 = vmatmul.mubr.f32.gmra.mrb[4].mxu0 %v370_v12 }
 0x1dd   :  { %v2302_v16 = vpop.f32.mrb[8].mxu1  ;;  %1287 = vmatprep.mubr.f32.mxu0 %v2770_v33 }
 0x1de   :  { %v3155_v17 = vadd.f32 %v2302_v16, %v3151_v15  ;;  %v3157_v18 = vpop.f32.mrb[9].mxu1 }
 0x2ab   :  { %v475_v19 = vpop.f32.mrb[2].mxu0 }
 0x2ac   :  { %2606 = vrsqrt.f32 %v475_v19  ;;  %v477_v20 = vpop.f32.mrb[3].mxu0  ;;  %vm486_vm3 = vcmp.eq.f32.partialorder %v475_v19, inf  ;;  %v489_v26 = vand.u32 2147483648, %v475_v19  ;;  %vm488_vm4 = vcmp.eq.f32.partialorder %v475_v19, 0.0 }
 0x2af   :  { %v3159_v22 = vpop.f32.mrb[4].mxu0 }
 0x2b0   :  { %v482_v23 = vpop.f32.mrb[5].mxu0  ;;  %vm493_vm5 = vcmp.eq.f32.partialorder %v3159_v22, inf  ;;  %vm495_vm6 = vcmp.eq.f32.partialorder %v3159_v22, 0.0 }
 0x2b6   :  { %v2607_v24 = vpop.eup %2606 }
 0x2b7   :  { %v485_v25 = vmul.f32 %v2607_v24, %v475_v19 }
 0x2b9   :  { %v487_v27 = vsel %vm486_vm3, %v475_v19, %v485_v25 }
 0x2ba   :  { %v490_v28 = vsel %vm488_vm4, %v489_v26, %v487_v27 }
 0x2bb   :  { %v498_v29 = vmax.f32 %v490_v28, 1e-06 }
 0x2bd   :  { %2608 = vrcp.f32 %v498_v29 }
 0x2c7   :  { %v2609_v30 = vpop.eup %2608 }
 0x2c8   :  { %648 = vrot.lane.b32.xlu1 %v2609_v30, %s2772_s8  ;;  %638 = vrot.lane.b32.xlu0 %v2609_v30, %s2773_s9 }
 0x2cc   :  { %506 = vrot.lane.b32.xlu1 %v2609_v30, %s2774_s22  ;;  %580 = vrot.lane.b32.xlu0 %v2609_v30, %s2775_s3 }
 0x2d0   :  { %522 = vrot.lane.b32.xlu1 %v2609_v30, %s2776_s23  ;;  %590 = vrot.lane.b32.xlu0 %v2609_v30, %s2777_s24 }
 0x2d4   :  { %514 = vrot.lane.b32.xlu1 %v2609_v30, %s2778_s25  ;;  %532 = vrot.lane.b32.xlu0 %v2609_v30, %s2779_s26 }
 0x33a   :  { %v649_v31 = vpop.permute.xlu1 %648  ;;  %v639_v32 = vpop.permute.xlu0 %638 }
 0x33b   :  { %v654_v35 = vmul.f32 %v649_v31, %v475_v19  ;;  %v644_v36 = vmul.f32 %v639_v32, %v475_v19 }
 0x33e   :  { %v507_v37 = vpop.permute.xlu1 %506  ;;  %v581_v38 = vpop.permute.xlu0 %580 }
 0x33f   :  { %v586_v39 = vmul.f32 %v581_v38, %v475_v19  ;;  %v646_v40 = vmul.f32 %v644_v36, %v581_v38  ;;  %v656_v41 = vmul.f32 %v654_v35, %v581_v38  ;;  %v512_v42 = vmul.f32 %v507_v37, %v475_v19 }
 0x341   :  { %v588_v43 = vmul.f32 %v586_v39, %v507_v37  ;;  %v662_v44 = vmul.f32 1.442695, %v646_v40  ;;  %v666_v48 = vmul.f32 1.442695, %v656_v41  ;;  %v2784_v40 = vmov 0   ;;  %v843_v41 = vld [vmem:[%s3563_s10 + $0x8] sm:$0xff] }
 0x342   :  { %v523_v45 = vpop.permute.xlu1 %522  ;;  %v591_v46 = vpop.permute.xlu0 %590 }
 0x343   :  { %v604_v47 = vmul.f32 1.442695, %v588_v43  ;;  %2610 = vpow2.f32 %v662_v44  ;;  %v596_v49 = vmul.f32 %v591_v46, %v475_v19  ;;  %v528_v50 = vmul.f32 %v523_v45, %v475_v19  ;;  %v842_v43 = vld [vmem:[%s3563_s10] sm:$0xff]  ;;  %v844_v45 = vld [vmem:[%s3563_s10 + $0x10] sm:$0xff]  ;;  %v847_v46 = vld [vmem:[%s3563_s10 + $0x28] sm:$0xff] }
 0x345   :  { %2612 = vpow2.f32 %v604_v47  ;;  %v598_v51 = vmul.f32 %v596_v49, %v507_v37  ;;  %v636_v52 = vmul.f32 %v596_v49, %v581_v38  ;;  %v849_v47 = vld [vmem:[%s3563_s10 + $0x38] sm:$0xff] }
 0x346   :  { %v515_v53 = vpop.permute.xlu1 %514  ;;  %v533_v55 = vpop.permute.xlu0 %532  ;;  %2614 = vpow2.f32 %v666_v48  ;;  %v2425_v48 = vpack.c.bf16 %v844_v45, %v842_v43  ;;  %v2427_v49 = vpack.c.bf16 %v849_v47, %v847_v46 }
 0x347   :  { %v608_v34 = vmul.f32 1.442695, %v598_v51  ;;  %v530_v57 = vmul.f32 %v528_v50, %v515_v53  ;;  %v538_v58 = vmul.f32 %v533_v55, %v475_v19  ;;  %v658_v7 = vmul.f32 1.442695, %v636_v52  ;;  %v846_v50 = vld [vmem:[%s3563_s10 + $0x20] sm:$0xff]  ;;  %v848_v51 = vld [vmem:[%s3563_s10 + $0x30] sm:$0xff] }
 0x348   :  { %v520_v9 = vmul.f32 %v515_v53, %v512_v42  ;;  %v845_v42 = vld [vmem:[%s3563_s10 + $0x18] sm:$0xff]  ;;  %v2429_v52 = vpack.c.bf16 %v848_v51, %v846_v50 }
 0x349   :  { %2616 = vpow2.f32 %v608_v34  ;;  %v546_v59 = vmul.f32 1.442695, %v530_v57  ;;  %v540_v60 = vmul.f32 %v538_v58, %v515_v53  ;;  %v578_v61 = vmul.f32 %v538_v58, %v507_v37 }
 0x34a   :  { %v542_v10 = vmul.f32 1.442695, %v520_v9  ;;  %v2423_v44 = vpack.c.bf16 %v845_v42, %v843_v41  ;;  %v496_v57 = vand.u32 2147483648, %v3159_v22 }
 0x34b   :  { %2618 = vpow2.f32 %v546_v59  ;;  %v550_v62 = vmul.f32 1.442695, %v540_v60  ;;  %v600_v8 = vmul.f32 1.442695, %v578_v61  ;;  %v851_v59 = vld [vmem:[%s3563_s10 + $0x48] sm:$0xff]  ;;  %v853_v60 = vld [vmem:[%s3563_s10 + $0x58] sm:$0xff] }
 0x34c   :  { %2424 = vmatprep.subr.bf16.mxu1 %v2423_v44  ;;  %v2431_v61 = vpack.c.bf16 %v853_v60, %v851_v59 }
 0x34d   :  { %v2611_v63 = vpop.eup %2610  ;;  %2620 = vpow2.f32 %v550_v62  ;;  %2426 = vmatpush1.bf16.msra.mxu1 %v2425_v48  ;;  %v850_v62 = vld [vmem:[%s3563_s10 + $0x40] sm:$0xff] }
 0x34e   :  { %672 = vrot.lane.b32.xlu0 %v2611_v63, %s2780_s29  ;;  %2622 = vpow2.f32 %v658_v7  ;;  %2428 = vmatprep.subr.bf16.mxu1 %v2427_v49  ;;  %v852_v63 = vld [vmem:[%s3563_s10 + $0x50] sm:$0xff] }
 0x34f   :  { %v2613_v0 = vpop.eup %2612  ;;  %2624 = vpow2.f32 %v600_v8  ;;  %v2433_v1 = vpack.c.bf16 %v852_v63, %v850_v62 }
 0x350   :  { %614 = vrot.lane.b32.xlu1 %v2613_v0, %s2780_s29  ;;  %v2615_v2 = vpop.eup %2614  ;;  %2626 = vpow2.f32 %v542_v10 }
 0x351   :  { %2430 = vmatpush1.bf16.msra.mxu1 %v2429_v52 }
 0x352   :  { %682 = vrot.lane.b32.xlu0 %v2615_v2, %s2782_s28  ;;  %2432 = vmatprep.subr.bf16.mxu1 %v2431_v61  ;;  %v774_v2 = vadd.f32 %v3151_v15, %v3157_v18 }
 0x353   :  { %v2617_v3 = vpop.eup %2616 }
 0x354   :  { %624 = vrot.lane.b32.xlu1 %v2617_v3, %s2782_s28 }
 0x355   :  { %v2619_v5 = vpop.eup %2618  ;;  %2434 = vmatpush1.bf16.msra.mxu1 %v2433_v1 }
 0x356   :  { %556 = vrot.lane.b32.xlu0 %v2619_v5, %s2780_s29 }
 0x357   :  { %v2621_v6 = vpop.eup %2620 }
 0x358   :  { %566 = vrot.lane.b32.xlu1 %v2621_v6, %s2782_s28  ;;  %v2623_v12 = vpop.eup %2622 }
 0x359   :  { %v2625_v19 = vpop.eup %2624 }
 0x35a   :  { %v2627_v27 = vpop.eup %2626 }
 0x3c0   :  { %v673_v11 = vpop.permute.xlu0 %672 }
 0x3c1   :  { %v678_v16 = vadd.f32 %v2623_v12, %v673_v11 }
 0x3c2   :  { %v615_v13 = vpop.permute.xlu1 %614 }
 0x3c3   :  { %v620_v23 = vadd.f32 %v2625_v19, %v615_v13 }
 0x3c4   :  { %v683_v20 = vpop.permute.xlu0 %682 }
 0x3c5   :  { %v688_v24 = vadd.f32 %v683_v20, %v678_v16 }
 0x3c6   :  { %v625_v25 = vpop.permute.xlu1 %624 }
 0x3c7   :  { %2628 = vrcp.f32 %v688_v24  ;;  %v630_v26 = vadd.f32 %v625_v25, %v620_v23 }
 0x3c8   :  { %v557_v28 = vpop.permute.xlu0 %556 }
 0x3c9   :  { %2630 = vrcp.f32 %v630_v26  ;;  %v562_v29 = vadd.f32 %v2627_v27, %v557_v28 }
 0x3ca   :  { %v567_v30 = vpop.permute.xlu1 %566 }
 0x3cb   :  { %v572_v31 = vadd.f32 %v567_v30, %v562_v29 }
 0x3cd   :  { %2632 = vrcp.f32 %v572_v31 }
 0x3ce   :  { %2634 = vrsqrt.f32 %v3159_v22 }
 0x3d1   :  { %v2629_v32 = vpop.eup %2628 }
 0x3d2   :  { %v691_v35 = vmul.f32 %v2629_v32, %v2623_v12 }
 0x3d3   :  { %v2631_v36 = vpop.eup %2630 }
 0x3d4   :  { %796 = vperm.xlu0 %2600, %v691_v35   ;;  %v633_v37 = vmul.f32 %v2631_v36, %v2625_v19 }
 0x3d6   :  { %808 = vperm.xlu1 %2601, %v633_v37  }
 0x3d7   :  { %v2633_v38 = vpop.eup %2632 }
 0x3d8   :  { %v575_v39 = vmul.f32 %v2633_v38, %v2627_v27  ;;  %v2635_v53 = vpop.eup %2634 }
 0x3d9   :  { %v492_v55 = vmul.f32 %v2635_v53, %v3159_v22 }
 0x3da   :  { %2602 = vset.pattern.permute.xlu1 %v2784_v40 }
 0x3db   :  { %784 = vperm.xlu1 %2602, %v575_v39   ;;  %v494_v34 = vsel %vm493_vm5, %v3159_v22, %v492_v55 }
 0x3dc   :  { %v497_v58 = vsel %vm495_vm6, %v496_v57, %v494_v34 }
 0x3dd   :  { %v499_v0 = vmax.f32 %v497_v58, 1e-06 }
 0x3df   :  { %2603 = vset.pattern.permute.xlu1 %v2783_v4  ;;  %2636 = vrcp.f32 %v499_v0 }
 0x3e9   :  { %v2637_v8 = vpop.eup %2636 }
 0x453   :  { %v797_v3 = vpop.permute.xlu0 %796 }
 0x454   :  { %v804_v5 = vmul.f32 %v797_v3, %v774_v2 }
 0x455   :  { %v809_v6 = vpop.permute.xlu1 %808 }
 0x456   :  { %v816_v7 = vmul.f32 %v809_v6, %v774_v2  ;;  %820 = vrot.lane.b32.xlu0 %v804_v5, %s2785_s2 }
 0x458   :  { %828 = vrot.lane.b32.xlu1 %v816_v7, %s2786_s30 }
 0x45a   :  { %640 = vrot.lane.b32.xlu0 %v2637_v8, %s2773_s9  ;;  %v785_v15 = vpop.permute.xlu1 %784 }
 0x45b   :  { %v792_v18 = vmul.f32 %v785_v15, %v774_v2 }
 0x45c   :  { %582 = vrot.lane.b32.xlu1 %v2637_v8, %s2775_s3 }
 0x45e   :  { %650 = vrot.lane.b32.xlu0 %v2637_v8, %s2772_s8 }
 0x460   :  { %508 = vrot.lane.b32.xlu1 %v2637_v8, %s2774_s22 }
 0x462   :  { %592 = vrot.lane.b32.xlu0 %v2637_v8, %s2777_s24 }
 0x464   :  { %524 = vrot.lane.b32.xlu1 %v2637_v8, %s2776_s23 }
 0x466   :  { %534 = vrot.lane.b32.xlu0 %v2637_v8, %s2779_s26 }
 0x468   :  { %516 = vrot.lane.b32.xlu1 %v2637_v8, %s2778_s25 }
 0x4c8   :  { %v821_v9 = vpop.permute.xlu0 %820 }
 0x4c9   :  { %v835_v10 = vsel %vm834_vm7, %v792_v18, %v821_v9 }
 0x4ca   :  { %v829_v11 = vpop.permute.xlu1 %828 }
 0x4cb   :  { %v838_v12 = vsel %vm837_vm8, %v835_v10, %v829_v11 }
 0x4cc   :  { %v840_v13 = vadd.f32 %v838_v12, %v3051_v14  ;;  %v641_v16 = vpop.permute.xlu0 %640 }
 0x4cd   :  { %v645_v19 = vmul.f32 %v641_v16, %v3159_v22 }
 0x4ce   :  { %2203 = vmatmul.mubr.msk.f32.vlgmr.msra.gmra.mrb[10].mxu1 %vm183_vm1, %v840_v13  ;;  %v583_v20 = vpop.permute.xlu1 %582 }
 0x4cf   :  { %v647_v23 = vmul.f32 %v645_v19, %v583_v20  ;;  %942 = vmatprep.mubr.f32.mxu1 %v2770_v33  ;;  %v587_v25 = vmul.f32 %v583_v20, %v3159_v22 }
 0x4d0   :  { %v651_v24 = vpop.permute.xlu0 %650 }
 0x4d1   :  { %v664_v26 = vmul.f32 1.442695, %v647_v23  ;;  %v655_v27 = vmul.f32 %v651_v24, %v3159_v22  ;;  %v854_v23 = vld [vmem:[%s3564_s11] sm:$0x3]  ;;  %s2787_s11 = smov 64  }
 0x4d2   :  { %v509_v28 = vpop.permute.xlu1 %508  ;;  %v3256_v24 = vrot.slane %v854_v23, %v3134_v54 }
 0x4d3   :  { %2638 = vpow2.f32 %v664_v26  ;;  %v657_v29 = vmul.f32 %v655_v27, %v583_v20  ;;  %v589_v30 = vmul.f32 %v587_v25, %v509_v28  ;;  %v513_v14 = vmul.f32 %v509_v28, %v3159_v22 }
 0x4d4   :  { %v593_v31 = vpop.permute.xlu0 %592 }
 0x4d5   :  { %v668_v32 = vmul.f32 1.442695, %v657_v29  ;;  %v606_v35 = vmul.f32 1.442695, %v589_v30  ;;  %v597_v36 = vmul.f32 %v593_v31, %v3159_v22 }
 0x4d6   :  { %v525_v37 = vpop.permute.xlu1 %524 }
 0x4d7   :  { %2640 = vpow2.f32 %v668_v32  ;;  %v599_v38 = vmul.f32 %v597_v36, %v509_v28  ;;  %v637_v39 = vmul.f32 %v597_v36, %v583_v20  ;;  %v529_v43 = vmul.f32 %v525_v37, %v3159_v22  ;;  %v982_v32 = vld [vmem:[%s3565_s12 + $0x8] sm:$0xff] }
 0x4d8   :  { %2642 = vpow2.f32 %v606_v35  ;;  %v535_v41 = vpop.permute.xlu0 %534  ;;  %v981_v35 = vld [vmem:[%s3565_s12] sm:$0xff] }
 0x4d9   :  { %v610_v42 = vmul.f32 1.442695, %v599_v38  ;;  %v539_v44 = vmul.f32 %v535_v41, %v3159_v22  ;;  %v660_v57 = vmul.f32 1.442695, %v637_v39  ;;  %v983_v38 = vld [vmem:[%s3565_s12 + $0x10] sm:$0xff] }
 0x4da   :  { %v517_v45 = vpop.permute.xlu1 %516  ;;  %v3285_v41 = vpack.c.bf16 %v983_v38, %v981_v35 }
 0x4db   :  { %2644 = vpow2.f32 %v610_v42  ;;  %v579_v46 = vmul.f32 %v539_v44, %v509_v28  ;;  %v531_v47 = vmul.f32 %v529_v43, %v517_v45  ;;  %v541_v48 = vmul.f32 %v539_v44, %v517_v45 }
 0x4dc   :  { %v521_v59 = vmul.f32 %v517_v45, %v513_v14  ;;  %v3263_v28 = vrot.slane %v854_v23, %v3139_v56  ;;  %v984_v56 = vld [vmem:[%s3565_s12 + $0x18] sm:$0xff]  ;;  %v986_v45 = vld [vmem:[%s3565_s12 + $0x28] sm:$0xff] }
 0x4dd   :  { %v2639_v49 = vpop.eup %2638  ;;  %v548_v50 = vmul.f32 1.442695, %v531_v47  ;;  %v552_v51 = vmul.f32 1.442695, %v541_v48  ;;  %v602_v58 = vmul.f32 1.442695, %v579_v46  ;;  %v3279_v37 = vpack.c.bf16 %v984_v56, %v982_v32 }
 0x4de   :  { %674 = vrot.lane.b32.xlu0 %v2639_v49, %s2780_s29  ;;  %v544_v60 = vmul.f32 1.442695, %v521_v59  ;;  %v988_v46 = vld [vmem:[%s3565_s12 + $0x38] sm:$0xff]  ;;  %v985_v47 = vld [vmem:[%s3565_s12 + $0x20] sm:$0xff]  ;;  %v987_v49 = vld [vmem:[%s3565_s12 + $0x30] sm:$0xff] }
 0x4df   :  { %2646 = vpow2.f32 %v548_v50  ;;  %2436 = vmatprep.subr.bf16.mxu1 %v3279_v37  ;;  %2468 = vmatprep.subr.bf16.mxu0 %v3279_v37  ;;  %v3304_v48 = vpack.c.bf16 %v988_v46, %v986_v45  ;;  %v3309_v50 = vpack.c.bf16 %v987_v49, %v985_v47 }
 0x4e0   :  { %2648 = vpow2.f32 %v552_v51  ;;  %2438 = vmatpush1.bf16.msra.mxu1 %v3285_v41  ;;  %2470 = vmatpush1.bf16.msra.mxu0 %v3285_v41  ;;  %v990_v51 = vld [vmem:[%s3565_s12 + $0x48] sm:$0xff] }
 0x4e1   :  { %v2641_v52 = vpop.eup %2640  ;;  %2650 = vpow2.f32 %v660_v57  ;;  %2440 = vmatprep.subr.bf16.mxu1 %v3304_v48  ;;  %v996_v57 = vld [vmem:[%s3565_s12 + $0x78] sm:$0xff]  ;;  %2472 = vmatprep.subr.bf16.mxu0 %v3304_v48 }
 0x4e2   :  { %v2643_v53 = vpop.eup %2642  ;;  %684 = vrot.lane.b32.xlu0 %v2641_v52, %s2782_s28  ;;  %2652 = vpow2.f32 %v602_v58  ;;  %v992_v52 = vld [vmem:[%s3565_s12 + $0x58] sm:$0xff] }
 0x4e3   :  { %616 = vrot.lane.b32.xlu1 %v2643_v53, %s2780_s29  ;;  %2654 = vpow2.f32 %v544_v60  ;;  %v989_v53 = vld [vmem:[%s3565_s12 + $0x40] sm:$0xff] }
 0x4e4   :  { %2442 = vmatpush1.bf16.msra.mxu1 %v3309_v50  ;;  %2474 = vmatpush1.bf16.msra.mxu0 %v3309_v50 }
 0x4e5   :  { %v2645_v55 = vpop.eup %2644 }
 0x4e7   :  { %626 = vrot.lane.b32.xlu1 %v2645_v55, %s2782_s28  ;;  %v3321_v55 = vpack.c.bf16 %v992_v52, %v990_v51 }
 0x4e9   :  { %v2647_v22 = vpop.eup %2646  ;;  %2444 = vmatprep.subr.bf16.mxu1 %v3321_v55  ;;  %2476 = vmatprep.subr.bf16.mxu0 %v3321_v55 }
 0x4ea   :  { %v2649_v34 = vpop.eup %2648  ;;  %558 = vrot.lane.b32.xlu0 %v2647_v22, %s2780_s29  ;;  %v991_v22 = vld [vmem:[%s3565_s12 + $0x50] sm:$0xff] }
 0x4eb   :  { %568 = vrot.lane.b32.xlu1 %v2649_v34, %s2782_s28  ;;  %v2651_v62 = vpop.eup %2650  ;;  %v994_v34 = vld [vmem:[%s3565_s12 + $0x68] sm:$0xff]  ;;  %v3334_v59 = vpack.c.bf16 %v991_v22, %v989_v53 }
 0x4ec   :  { %v2653_v3 = vpop.eup %2652  ;;  %v3338_v60 = vpack.c.bf16 %v996_v57, %v994_v34 }
 0x4ed   :  { %v2655_v8 = vpop.eup %2654  ;;  %2446 = vmatpush1.bf16.msra.mxu1 %v3334_v59  ;;  %2478 = vmatpush1.bf16.msra.mxu0 %v3334_v59 }
 0x4ee   :  { %2448 = vmatprep.subr.bf16.mxu1 %v3338_v60  ;;  %2480 = vmatprep.subr.bf16.mxu0 %v3338_v60 }
 0x550   :  { %v675_v61 = vpop.permute.xlu0 %674 }
 0x551   :  { %v679_v63 = vadd.f32 %v2651_v62, %v675_v61  ;;  %v993_v61 = vld [vmem:[%s3565_s12 + $0x60] sm:$0xff] }
 0x554   :  { %v685_v0 = vpop.permute.xlu0 %684 }
 0x555   :  { %v617_v1 = vpop.permute.xlu1 %616  ;;  %v689_v2 = vadd.f32 %v685_v0, %v679_v63 }
 0x556   :  { %v621_v5 = vadd.f32 %v2653_v3, %v617_v1 }
 0x557   :  { %2656 = vrcp.f32 %v689_v2 }
 0x559   :  { %v627_v6 = vpop.permute.xlu1 %626 }
 0x55a   :  { %v631_v7 = vadd.f32 %v627_v6, %v621_v5 }
 0x55c   :  { %2658 = vrcp.f32 %v631_v7  ;;  %v559_v15 = vpop.permute.xlu0 %558 }
 0x55d   :  { %v563_v18 = vadd.f32 %v2655_v8, %v559_v15  ;;  %v569_v9 = vpop.permute.xlu1 %568 }
 0x55f   :  { %v573_v11 = vadd.f32 %v569_v9, %v563_v18 }
 0x561   :  { %v2657_v10 = vpop.eup %2656  ;;  %2660 = vrcp.f32 %v573_v11 }
 0x562   :  { %v693_v12 = vmul.f32 %v2657_v10, %v2651_v62  ;;  %v995_v62 = vld [vmem:[%s3565_s12 + $0x70] sm:$0xff]  ;;  %s2788_s12 = smov 72  }
 0x563   :  { %v3348_v1 = vpack.c.bf16 %v995_v62, %v993_v61 }
 0x564   :  { %801 = vperm.xlu0 %2600, %v693_v12  }
 0x565   :  { %2450 = vmatpush1.bf16.msra.mxu1 %v3348_v1  ;;  %2482 = vmatpush1.bf16.msra.mxu0 %v3348_v1 }
 0x566   :  { %v2659_v13 = vpop.eup %2658  ;;  %2452 = vmatprep.subr.bf16.mxu1 %v3279_v37  ;;  %2500 = vmatprep.subr.bf16.mxu0 %v3279_v37 }
 0x567   :  { %v635_v16 = vmul.f32 %v2659_v13, %v2653_v3 }
 0x568   :  { %2605 = vset.pattern.permute.xlu0 %v2783_v4 }
 0x569   :  { %813 = vperm.xlu1 %2603, %v635_v16  }
 0x56b   :  { %v2661_v19 = vpop.eup %2660 }
 0x56c   :  { %v577_v20 = vmul.f32 %v2661_v19, %v2655_v8 }
 0x56d   :  { %2604 = vset.pattern.permute.xlu1 %v2784_v40 }
 0x56e   :  { %789 = vperm.xlu1 %2604, %v577_v20  }
 0x5a1   :  { %v938_v25 = vpop.f32.mrb[10].mxu1 }
 0x5a2   :  { %v3259_v26 = vadd.f32 %v938_v25, %v3256_v24  ;;  %v940_v27 = vpop.f32.mrb[11].mxu1 }
 0x5a3   :  { %v3266_v40 = vadd.f32 %v940_v27, %v3263_v28 }
 0x5a4   :  { %v2205_v4 = vmul.f32 -1.442695, %v3259_v26 }
 0x5a5   :  { %v2206_v44 = vmul.f32 -1.442695, %v3266_v40 }
 0x5a6   :  { %2662 = vpow2.f32 %v2205_v4 }
 0x5a7   :  { %2664 = vtanh.f32 %v3266_v40 }
 0x5b0   :  { %v2663_v29 = vpop.eup %2662 }
 0x5b1   :  { %v955_v30 = vadd.f32 1.0, %v2663_v29  ;;  %v2665_v54 = vpop.eup %2664 }
 0x5b3   :  { %2666 = vrcp.f32 %v955_v30 }
 0x5b4   :  { %2668 = vpow2.f32 %v2206_v44 }
 0x5bd   :  { %v2667_v14 = vpop.eup %2666 }
 0x5be   :  { %v963_v31 = vmul.f32 %v2667_v14, %v2665_v54  ;;  %v2669_v58 = vpop.eup %2668  ;;  %v962_v0 = vmul.f32 0.0, %v2667_v14 }
 0x5bf   :  { %v956_v63 = vadd.f32 1.0, %v2669_v58 }
 0x5c0   :  { %965 = vrot.lane.b32.xlu0 %v963_v31, %s2787_s11 }
 0x5c1   :  { %2670 = vrcp.f32 %v956_v63 }
 0x5cb   :  { %v2671_v5 = vpop.eup %2670 }
 0x5e3   :  { %v802_v36 = vpop.permute.xlu0 %801 }
 0x5e4   :  { %v805_v39 = vmul.f32 %v802_v36, %v3155_v17 }
 0x5e6   :  { %822 = vrot.lane.b32.xlu0 %v805_v39, %s2785_s2 }
 0x5e8   :  { %v814_v42 = vpop.permute.xlu1 %813 }
 0x5e9   :  { %v817_v43 = vmul.f32 %v814_v42, %v3155_v17 }
 0x5eb   :  { %830 = vrot.lane.b32.xlu1 %v817_v43, %s2786_s30 }
 0x5ed   :  { %v790_v8 = vpop.permute.xlu1 %789 }
 0x5ee   :  { %v793_v18 = vmul.f32 %v790_v8, %v3155_v17 }
 0x632   :  { %v966_v2 = vpop.permute.xlu0 %965 }
 0x633   :  { %v968_v3 = vadd.f32 %v966_v2, %v962_v0 }
 0x635   :  { %2672 = vtanh.f32 %v968_v3  ;;  %977 = vrot.lane.b32.xlu1 %v968_v3, %s2787_s11 }
 0x63f   :  { %v2673_v6 = vpop.eup %2672 }
 0x640   :  { %v970_v7 = vmul.f32 %v2673_v6, %v2671_v5 }
 0x642   :  { %972 = vrot.lane.b32.xlu0 %v970_v7, %s2787_s11 }
 0x658   :  { %v823_v15 = vpop.permute.xlu0 %822 }
 0x659   :  { %v836_v9 = vsel %vm834_vm7, %v793_v18, %v823_v15 }
 0x65d   :  { %v831_v10 = vpop.permute.xlu1 %830 }
 0x65e   :  { %v839_v11 = vsel %vm837_vm8, %v836_v9, %v831_v10 }
 0x65f   :  { %v841_v12 = vadd.f32 %v839_v11, %v3068_v21 }
 0x661   :  { %2204 = vmatmul.mubr.msk.f32.gmra.mrb[12].mxu1 %vm183_vm1, %v841_v12  ;;  %vm2179_vm1 = vcmask 589126  }
 0x662   :  { %1065 = vmatprep.mubr.f32.mxu1 %v2770_v33 }
 0x6a7   :  { %v978_v13 = vpop.permute.xlu1 %977 }
 0x6a8   :  { %v980_v16 = vsel %vm837_vm8, %v978_v13, 0.0 }
 0x6a9   :  { %v1094_v19 = vrot.slane %v980_v16, 6 }
 0x6ab   :  { %1095 = vrot.lane.b32.xlu0 %v1094_v19, %s2787_s11 }
 0x6b4   :  { %v973_v20 = vpop.permute.xlu0 %972 }
 0x6b5   :  { %v975_v17 = vsel %vm837_vm8, %v973_v20, 0.0 }
 0x6b6   :  { %2207 = vmatmul.mubr.msk.f32.vlgmr.msra.gmra.mrb[14].mxu1 %vm997_vm9, %v975_v17 }
 0x6b7   :  { %2454 = vmatpush1.bf16.msra.mxu1 %v3285_v41  ;;  %1177 = vmatprep.mubr.f32.mxu1 %v2770_v33 }
 0x6b8   :  { %2456 = vmatprep.subr.bf16.mxu1 %v3304_v48 }
 0x6bb   :  { %2458 = vmatpush1.bf16.msra.mxu1 %v3309_v50 }
 0x6bc   :  { %2460 = vmatprep.subr.bf16.mxu1 %v3321_v55 }
 0x6bf   :  { %2462 = vmatpush1.bf16.msra.mxu1 %v3334_v59 }
 0x6c0   :  { %2464 = vmatprep.subr.bf16.mxu1 %v3338_v60 }
 0x6c3   :  { %2466 = vmatpush1.bf16.msra.mxu1 %v3348_v1 }
 0x6c4   :  { %2484 = vmatprep.subr.bf16.mxu1 %v3279_v37 }
 0x71d   :  { %v1096_v42 = vpop.permute.xlu0 %1095 }
 0x734   :  { %v3378_v21 = vpop.f32.mrb[12].mxu1 }
 0x735   :  { %v3380_v23 = vpop.f32.mrb[13].mxu1 }
 0x789   :  { %v1067_v25 = vpop.f32.mrb[14].mxu1 }
 0x78a   :  { %v1074_v27 = vrot.slane %v1067_v25, 6  ;;  %v1069_v4 = vpop.f32.mrb[15].mxu1 }
 0x78b   :  { %v1075_v54 = vrot.slane %v1069_v4, 6 }
 0x78c   :  { %v1078_v29 = vadd.f32 %v1074_v27, %v3259_v26 }
 0x78d   :  { %v1079_v14 = vadd.f32 %v1075_v54, %v3266_v40 }
 0x78e   :  { %v2208_v30 = vmul.f32 -1.442695, %v1078_v29 }
 0x78f   :  { %v2209_v38 = vmul.f32 -1.442695, %v1079_v14 }
 0x790   :  { %2674 = vpow2.f32 %v2208_v30 }
 0x791   :  { %2676 = vtanh.f32 %v1079_v14 }
 0x79a   :  { %v2675_v31 = vpop.eup %2674 }
 0x79b   :  { %v1086_v32 = vadd.f32 1.0, %v2675_v31  ;;  %v2677_v56 = vpop.eup %2676 }
 0x79d   :  { %2678 = vrcp.f32 %v1086_v32 }
 0x79e   :  { %2680 = vpow2.f32 %v2209_v38 }
 0x7a7   :  { %v2679_v35 = vpop.eup %2678 }
 0x7a8   :  { %v1099_v36 = vmul.f32 %v2679_v35, %v2677_v56  ;;  %v2681_v39 = vpop.eup %2680  ;;  %v1098_v44 = vmul.f32 %v2679_v35, %v1096_v42 }
 0x7a9   :  { %v1087_v43 = vadd.f32 1.0, %v2681_v39 }
 0x7aa   :  { %1101 = vrot.lane.b32.xlu1 %v1099_v36, %s2787_s11 }
 0x7ab   :  { %2682 = vrcp.f32 %v1087_v43 }
 0x7b5   :  { %v2683_v47 = vpop.eup %2682 }
 0x81c   :  { %v1102_v45 = vpop.permute.xlu1 %1101 }
 0x81d   :  { %v1104_v46 = vadd.f32 %v1102_v45, %v1098_v44 }
 0x81f   :  { %2684 = vtanh.f32 %v1104_v46  ;;  %v1206_v5 = vrot.slane %v1104_v46, 6 }
 0x829   :  { %v2685_v49 = vpop.eup %2684 }
 0x82a   :  { %v3385_v51 = vmul.f32 %v2685_v49, %v2683_v47 }
 0x82c   :  { %v1108_v52 = vrot.slane %v3385_v51, 2  ;;  %v3435_v51 = vadd.f32 %v3378_v21, %v3256_v24 }
 0x82e   :  { %1109 = vrot.lane.b32.xlu0 %v1108_v52, %s2787_s11 }
 0x8a0   :  { %v1110_v53 = vpop.permute.xlu0 %1109 }
 0x8a1   :  { %2210 = vmatmul.mubr.msk.f32.vlgmr.msra.gmra.mrb[16].mxu1 %vm997_vm9, %v1110_v53 }
 0x8a2   :  { %2486 = vmatpush1.bf16.msra.mxu1 %v3285_v41  ;;  %1397 = vmatprep.mubr.f32.mxu1 %v2770_v33 }
 0x8a3   :  { %2488 = vmatprep.subr.bf16.mxu1 %v3304_v48 }
 0x8a6   :  { %2490 = vmatpush1.bf16.msra.mxu1 %v3309_v50 }
 0x8a7   :  { %2492 = vmatprep.subr.bf16.mxu1 %v3321_v55 }
 0x8aa   :  { %2494 = vmatpush1.bf16.msra.mxu1 %v3334_v59 }
 0x8ab   :  { %2496 = vmatprep.subr.bf16.mxu1 %v3338_v60 }
 0x8ae   :  { %2498 = vmatpush1.bf16.msra.mxu1 %v3348_v1 }
 0x8af   :  { %2516 = vmatprep.subr.bf16.mxu1 %v3279_v37 }
 0x974   :  { %v1179_v22 = vpop.f32.mrb[16].mxu1 }
 0x975   :  { %v1186_v34 = vrot.slane %v1179_v22, 4  ;;  %v1181_v57 = vpop.f32.mrb[17].mxu1 }
 0x976   :  { %v1187_v62 = vrot.slane %v1181_v57, 4 }
 0x977   :  { %v1190_v58 = vadd.f32 %v1186_v34, %v3259_v26 }
 0x978   :  { %v1191_v63 = vadd.f32 %v1187_v62, %v3266_v40 }
 0x979   :  { %v2211_v61 = vmul.f32 -1.442695, %v1190_v58 }
 0x97a   :  { %v2212_v15 = vmul.f32 -1.442695, %v1191_v63 }
 0x97b   :  { %2686 = vpow2.f32 %v2211_v61 }
 0x97c   :  { %2688 = vtanh.f32 %v1191_v63  ;;  %v3440_v63 = vadd.f32 %v3380_v23, %v3263_v28 }
 0x985   :  { %v2687_v0 = vpop.eup %2686 }
 0x986   :  { %v1198_v2 = vadd.f32 1.0, %v2687_v0  ;;  %v2689_v3 = vpop.eup %2688 }
 0x988   :  { %2690 = vrcp.f32 %v1198_v2 }
 0x989   :  { %2692 = vpow2.f32 %v2212_v15 }
 0x992   :  { %v2691_v6 = vpop.eup %2690 }
 0x993   :  { %v1209_v7 = vmul.f32 %v2691_v6, %v2689_v3  ;;  %v1208_v8 = vmul.f32 %v2691_v6, %v1206_v5  ;;  %v2693_v18 = vpop.eup %2692 }
 0x994   :  { %v1199_v9 = vadd.f32 1.0, %v2693_v18 }
 0x995   :  { %1211 = vrot.lane.b32.xlu1 %v1209_v7, %s2787_s11 }
 0x996   :  { %2694 = vrcp.f32 %v1199_v9 }
 0x9a0   :  { %v2695_v12 = vpop.eup %2694 }
 0xa07   :  { %v1212_v10 = vpop.permute.xlu1 %1211 }
 0xa08   :  { %v1214_v11 = vadd.f32 %v1212_v10, %v1208_v8 }
 0xa0a   :  { %2696 = vtanh.f32 %v1214_v11  ;;  %v1316_v56 = vrot.slane %v1214_v11, 6 }
 0xa14   :  { %v2697_v13 = vpop.eup %2696 }
 0xa15   :  { %v1216_v16 = vmul.f32 %v2697_v13, %v2695_v12 }
 0xa17   :  { %v1218_v19 = vrot.slane %v1216_v16, 4  ;;  %v1865_v46 = vrot.slane %v1216_v16, 2 }
 0xa19   :  { %1219 = vrot.lane.b32.xlu0 %v1218_v19, %s2787_s11  ;;  %v1880_v22 = vsel %vm1879_vm10, %v1108_v52, %v1865_v46 }
 0xa8b   :  { %v1220_v20 = vpop.permute.xlu0 %1219 }
 0xa8c   :  { %2213 = vmatmul.mubr.msk.f32.vlgmr.msra.gmra.mrb[6].mxu0 %vm997_vm9, %v1220_v20 }
 0xa8d   :  { %2502 = vmatpush1.bf16.msra.mxu0 %v3285_v41  ;;  %1500 = vmatprep.mubr.f32.mxu0 %v2770_v33 }
 0xa8e   :  { %2504 = vmatprep.subr.bf16.mxu0 %v3304_v48 }
 0xa91   :  { %2506 = vmatpush1.bf16.msra.mxu0 %v3309_v50 }
 0xa92   :  { %2508 = vmatprep.subr.bf16.mxu0 %v3321_v55 }
 0xa95   :  { %2510 = vmatpush1.bf16.msra.mxu0 %v3334_v59 }
 0xa96   :  { %2512 = vmatprep.subr.bf16.mxu0 %v3338_v60 }
 0xa99   :  { %2514 = vmatpush1.bf16.msra.mxu0 %v3348_v1 }
 0xa9a   :  { %2532 = vmatprep.subr.bf16.mxu0 %v3279_v37 }
 0xb5f   :  { %v1289_v17 = vpop.f32.mrb[6].mxu0 }
 0xb60   :  { %v1296_v25 = vrot.slane %v1289_v17, 2  ;;  %v1291_v27 = vpop.f32.mrb[7].mxu0 }
 0xb61   :  { %v1297_v30 = vrot.slane %v1291_v27, 2 }
 0xb62   :  { %v1300_v4 = vadd.f32 %v1296_v25, %v3259_v26 }
 0xb63   :  { %v1301_v54 = vadd.f32 %v1297_v30, %v3266_v40 }
 0xb64   :  { %v2214_v29 = vmul.f32 -1.442695, %v1300_v4 }
 0xb65   :  { %v2215_v39 = vmul.f32 -1.442695, %v1301_v54 }
 0xb66   :  { %2698 = vpow2.f32 %v2214_v29 }
 0xb67   :  { %2700 = vtanh.f32 %v1301_v54 }
 0xb70   :  { %v2699_v14 = vpop.eup %2698 }
 0xb71   :  { %v1308_v31 = vadd.f32 1.0, %v2699_v14  ;;  %v2701_v32 = vpop.eup %2700 }
 0xb73   :  { %2702 = vrcp.f32 %v1308_v31 }
 0xb74   :  { %2704 = vpow2.f32 %v2215_v39 }
 0xb7d   :  { %v2703_v35 = vpop.eup %2702 }
 0xb7e   :  { %v1319_v36 = vmul.f32 %v2703_v35, %v2701_v32  ;;  %v1318_v38 = vmul.f32 %v2703_v35, %v1316_v56  ;;  %v2705_v42 = vpop.eup %2704 }
 0xb7f   :  { %v1309_v26 = vadd.f32 1.0, %v2705_v42 }
 0xb80   :  { %1321 = vrot.lane.b32.xlu1 %v1319_v36, %s2787_s11 }
 0xb81   :  { %2706 = vrcp.f32 %v1309_v26 }
 0xb8b   :  { %v2707_v40 = vpop.eup %2706 }
 0xbf2   :  { %v1322_v43 = vpop.permute.xlu1 %1321 }
 0xbf3   :  { %v1324_v44 = vadd.f32 %v1322_v43, %v1318_v38 }
 0xbf5   :  { %2708 = vtanh.f32 %v1324_v44  ;;  %v1420_v5 = vrot.slane %v1324_v44, 6 }
 0xbff   :  { %v2709_v45 = vpop.eup %2708 }
 0xc00   :  { %v1326_v47 = vmul.f32 %v2709_v45, %v2707_v40 }
 0xc02   :  { %v1328_v49 = vrot.slane %v1326_v47, 6  ;;  %v1867_v53 = vrot.slane %v1326_v47, 2 }
 0xc04   :  { %1329 = vrot.lane.b32.xlu0 %v1328_v49, %s2787_s11  ;;  %v1882_v34 = vsel %vm1881_vm11, %v1880_v22, %v1867_v53 }
 0xc76   :  { %v1330_v57 = vpop.permute.xlu0 %1329 }
 0xc77   :  { %2216 = vmatmul.mubr.msk.f32.vlgmr.msra.gmra.mrb[18].mxu1 %vm997_vm9, %v1330_v57 }
 0xc78   :  { %2518 = vmatpush1.bf16.msra.mxu1 %v3285_v41  ;;  %1610 = vmatprep.mubr.f32.mxu1 %v2770_v33 }
 0xc79   :  { %2520 = vmatprep.subr.bf16.mxu1 %v3304_v48 }
 0xc7c   :  { %2522 = vmatpush1.bf16.msra.mxu1 %v3309_v50 }
 0xc7d   :  { %2524 = vmatprep.subr.bf16.mxu1 %v3321_v55 }
 0xc80   :  { %2526 = vmatpush1.bf16.msra.mxu1 %v3334_v59 }
 0xc81   :  { %2528 = vmatprep.subr.bf16.mxu1 %v3338_v60 }
 0xc84   :  { %2530 = vmatpush1.bf16.msra.mxu1 %v3348_v1 }
 0xc85   :  { %2548 = vmatprep.subr.bf16.mxu1 %v3279_v37 }
 0xd4a   :  { %v1399_v52 = vpop.f32.mrb[18].mxu1 }
 0xd4b   :  { %v1404_v58 = vadd.f32 %v1399_v52, %v3435_v51  ;;  %v1401_v61 = vpop.f32.mrb[19].mxu1 }
 0xd4c   :  { %v1405_v0 = vadd.f32 %v1401_v61, %v3440_v63 }
 0xd4d   :  { %v2217_v62 = vmul.f32 -1.442695, %v1404_v58 }
 0xd4e   :  { %v2218_v8 = vmul.f32 -1.442695, %v1405_v0 }
 0xd4f   :  { %2710 = vpow2.f32 %v2217_v62 }
 0xd50   :  { %2712 = vtanh.f32 %v1405_v0 }
 0xd59   :  { %v2711_v2 = vpop.eup %2710 }
 0xd5a   :  { %v1412_v3 = vadd.f32 1.0, %v2711_v2  ;;  %v2713_v37 = vpop.eup %2712 }
 0xd5c   :  { %2714 = vrcp.f32 %v1412_v3 }
 0xd5d   :  { %2716 = vpow2.f32 %v2218_v8 }
 0xd66   :  { %v2715_v21 = vpop.eup %2714 }
 0xd67   :  { %v1423_v6 = vmul.f32 %v2715_v21, %v2713_v37  ;;  %v1422_v7 = vmul.f32 %v2715_v21, %v1420_v5  ;;  %v2717_v15 = vpop.eup %2716 }
 0xd68   :  { %v1413_v18 = vadd.f32 1.0, %v2717_v15 }
 0xd69   :  { %1425 = vrot.lane.b32.xlu1 %v1423_v6, %s2787_s11 }
 0xd6a   :  { %2718 = vrcp.f32 %v1413_v18 }
 0xd74   :  { %v2719_v10 = vpop.eup %2718 }
 0xddb   :  { %v1426_v9 = vpop.permute.xlu1 %1425 }
 0xddc   :  { %v1428_v23 = vadd.f32 %v1426_v9, %v1422_v7 }
 0xdde   :  { %2720 = vtanh.f32 %v1428_v23  ;;  %v1529_v32 = vrot.slane %v1428_v23, 6 }
 0xde8   :  { %v2721_v11 = vpop.eup %2720 }
 0xde9   :  { %v1430_v12 = vmul.f32 %v2721_v11, %v2719_v10 }
 0xdeb   :  { %1432 = vrot.lane.b32.xlu0 %v1430_v12, %s2787_s11  ;;  %v1869_v13 = vrot.slane %v1430_v12, 2 }
 0xded   :  { %v3446_v16 = vsel %vm1883_vm12, %v1882_v34, %v1869_v13 }
 0xe5d   :  { %v1433_v19 = vpop.permute.xlu0 %1432 }
 0xe5e   :  { %2219 = vmatmul.mubr.msk.f32.vlgmr.msra.gmra.mrb[8].mxu0 %vm997_vm9, %v1433_v19 }
 0xe5f   :  { %2534 = vmatpush1.bf16.msra.mxu0 %v3285_v41  ;;  %1720 = vmatprep.mubr.f32.mxu0 %v2770_v33 }
 0xe60   :  { %2536 = vmatprep.subr.bf16.mxu0 %v3304_v48 }
 0xe63   :  { %2538 = vmatpush1.bf16.msra.mxu0 %v3309_v50 }
 0xe64   :  { %2540 = vmatprep.subr.bf16.mxu0 %v3321_v55 }
 0xe67   :  { %2542 = vmatpush1.bf16.msra.mxu0 %v3334_v59 }
 0xe68   :  { %2544 = vmatprep.subr.bf16.mxu0 %v3338_v60 }
 0xe6b   :  { %2546 = vmatpush1.bf16.msra.mxu0 %v3348_v1 }
 0xf31   :  { %v1502_v20 = vpop.f32.mrb[8].mxu0 }
 0xf32   :  { %v1509_v17 = vrot.slane %v1502_v20, 6  ;;  %v1504_v25 = vpop.f32.mrb[9].mxu0 }
 0xf33   :  { %v1510_v29 = vrot.slane %v1504_v25, 6 }
 0xf34   :  { %v1513_v27 = vadd.f32 %v1509_v17, %v3435_v51 }
 0xf35   :  { %v1514_v30 = vadd.f32 %v1510_v29, %v3440_v63 }
 0xf36   :  { %v2220_v4 = vmul.f32 -1.442695, %v1513_v27 }
 0xf37   :  { %v2221_v38 = vmul.f32 -1.442695, %v1514_v30 }
 0xf38   :  { %2722 = vpow2.f32 %v2220_v4 }
 0xf39   :  { %2724 = vtanh.f32 %v1514_v30 }
 0xf42   :  { %v2723_v54 = vpop.eup %2722 }
 0xf43   :  { %v1521_v14 = vadd.f32 1.0, %v2723_v54  ;;  %v2725_v31 = vpop.eup %2724 }
 0xf45   :  { %2726 = vrcp.f32 %v1521_v14 }
 0xf46   :  { %2728 = vpow2.f32 %v2221_v38  ;;  %v1888_v38 = vmax.f32 %v3446_v16, 0.0 }
 0xf4f   :  { %v2727_v56 = vpop.eup %2726 }
 0xf50   :  { %v1532_v35 = vmul.f32 %v2727_v56, %v2725_v31  ;;  %v1531_v36 = vmul.f32 %v2727_v56, %v1529_v32  ;;  %v2729_v39 = vpop.eup %2728 }
 0xf51   :  { %v1522_v42 = vadd.f32 1.0, %v2729_v39 }
 0xf52   :  { %1534 = vrot.lane.b32.xlu1 %v1532_v35, %s2787_s11 }
 0xf53   :  { %2730 = vrcp.f32 %v1522_v42 }
 0xf5d   :  { %v2731_v44 = vpop.eup %2730 }
 0xfc4   :  { %v1535_v26 = vpop.permute.xlu1 %1534 }
 0xfc5   :  { %v1537_v43 = vadd.f32 %v1535_v26, %v1531_v36 }
 0xfc7   :  { %2732 = vtanh.f32 %v1537_v43 }
 0xfd1   :  { %v2733_v40 = vpop.eup %2732 }
 0xfd2   :  { %v3460_v45 = vmul.f32 %v2733_v40, %v2731_v44 }
 0xfd4   :  { %v1541_v46 = vrot.slane %v3460_v45, 2 }
 0xfd6   :  { %1542 = vrot.lane.b32.xlu0 %v1541_v46, %s2787_s11 }
0x1048   :  { %v1543_v47 = vpop.permute.xlu0 %1542 }
0x1049   :  { %2222 = vmatmul.mubr.msk.f32.vlgmr.msra.gmra.mrb[20].mxu1 %vm997_vm9, %v1543_v47 }
0x104a   :  { %2550 = vmatpush1.bf16.msra.mxu1 %v3285_v41  ;;  %1830 = vmatprep.mubr.f32.mxu1 %v2770_v33 }
0x104b   :  { %2552 = vmatprep.subr.bf16.mxu1 %v3304_v48 }
0x104e   :  { %2554 = vmatpush1.bf16.msra.mxu1 %v3309_v50 }
0x104f   :  { %2556 = vmatprep.subr.bf16.mxu1 %v3321_v55 }
0x1052   :  { %2558 = vmatpush1.bf16.msra.mxu1 %v3334_v59  ;;  %v1639_v59 = vrot.slane %v1537_v43, 6 }
0x1053   :  { %2560 = vmatprep.subr.bf16.mxu1 %v3338_v60 }
0x1056   :  { %2562 = vmatpush1.bf16.msra.mxu1 %v3348_v1 }
0x111c   :  { %v1612_v49 = vpop.f32.mrb[20].mxu1 }
0x111d   :  { %v1619_v53 = vrot.slane %v1612_v49, 4  ;;  %v1614_v22 = vpop.f32.mrb[21].mxu1 }
0x111e   :  { %v1620_v33 = vrot.slane %v1614_v22, 4 }
0x111f   :  { %v1623_v34 = vadd.f32 %v1619_v53, %v3435_v51 }
0x1120   :  { %v1624_v48 = vadd.f32 %v1620_v33, %v3440_v63 }
0x1121   :  { %v2223_v41 = vmul.f32 -1.442695, %v1623_v34 }
0x1122   :  { %v2224_v1 = vmul.f32 -1.442695, %v1624_v48 }
0x1123   :  { %2734 = vpow2.f32 %v2223_v41  ;;  %v1891_v41 = vld [vmem:[%s3566_s13 + $0x8] sm:$0xff] }
0x1124   :  { %2736 = vtanh.f32 %v1624_v48  ;;  %v1893_v48 = vld [vmem:[%s3566_s13 + $0x18] sm:$0xff] }
0x112d   :  { %v2735_v57 = vpop.eup %2734 }
0x112e   :  { %v1631_v50 = vadd.f32 1.0, %v2735_v57  ;;  %v2737_v55 = vpop.eup %2736 }
0x1130   :  { %2738 = vrcp.f32 %v1631_v50 }
0x1131   :  { %2740 = vpow2.f32 %v2224_v1 }
0x113a   :  { %v2739_v52 = vpop.eup %2738 }
0x113b   :  { %v1642_v60 = vmul.f32 %v2739_v52, %v2737_v55  ;;  %v1641_v58 = vmul.f32 %v2739_v52, %v1639_v59  ;;  %v2741_v61 = vpop.eup %2740 }
0x113c   :  { %v1632_v62 = vadd.f32 1.0, %v2741_v61 }
0x113d   :  { %1644 = vrot.lane.b32.xlu1 %v1642_v60, %s2787_s11 }
0x113e   :  { %2742 = vrcp.f32 %v1632_v62 }
0x1148   :  { %v2743_v3 = vpop.eup %2742 }
0x11af   :  { %v1645_v0 = vpop.permute.xlu1 %1644 }
0x11b0   :  { %v1647_v2 = vadd.f32 %v1645_v0, %v1641_v58 }
0x11b2   :  { %2744 = vtanh.f32 %v1647_v2  ;;  %v1749_v19 = vrot.slane %v1647_v2, 6 }
0x11bc   :  { %v2745_v37 = vpop.eup %2744 }
0x11bd   :  { %v1649_v5 = vmul.f32 %v2745_v37, %v2743_v3  ;;  %v1988_v37 = vld [vmem:[%s3567_s15] sm:$0xff] }
0x11bf   :  { %v1651_v21 = vrot.slane %v1649_v5, 4  ;;  %v1872_v14 = vrot.slane %v1649_v5, 2  ;;  %v1989_v5 = vld [vmem:[%s3567_s15 + $0x8] sm:$0xff] }
0x11c1   :  { %1652 = vrot.lane.b32.xlu0 %v1651_v21, %s2787_s11  ;;  %v1885_v35 = vsel %vm1879_vm10, %v1541_v46, %v1872_v14  ;;  %v2571_v21 = vpack.c.bf16 %v1989_v5, %v1988_v37 }
0x11c3   :  { %2572 = vmatprep.subr.bf16.mxu1 %v2571_v21 }
0x1233   :  { %v1653_v6 = vpop.permute.xlu0 %1652 }
0x1234   :  { %2225 = vmatmul.mubr.msk.f32.vlgmr.msra.gmra.mrb[10].mxu0 %vm997_vm9, %v1653_v6  ;;  %v1990_v6 = vld [vmem:[%s3567_s15 + $0x10] sm:$0xff] }
0x1307   :  { %v1722_v7 = vpop.f32.mrb[10].mxu0 }
0x1308   :  { %v1729_v8 = vrot.slane %v1722_v7, 2  ;;  %v1724_v15 = vpop.f32.mrb[11].mxu0  ;;  %v2231_v7 = vld [vmem:[%s3568_s14] ss:$0 sm:$0xff] }
0x1309   :  { %v1730_v23 = vrot.slane %v1724_v15, 2 }
0x130a   :  { %v1733_v18 = vadd.f32 %v1729_v8, %v3435_v51 }
0x130b   :  { %v1734_v10 = vadd.f32 %v1730_v23, %v3440_v63 }
0x130c   :  { %v2226_v9 = vmul.f32 -1.442695, %v1733_v18 }
0x130d   :  { %v2227_v27 = vmul.f32 -1.442695, %v1734_v10 }
0x130e   :  { %2746 = vpow2.f32 %v2226_v9 }
0x130f   :  { %2748 = vtanh.f32 %v1734_v10 }
0x1318   :  { %v2747_v11 = vpop.eup %2746 }
0x1319   :  { %v1741_v12 = vadd.f32 1.0, %v2747_v11  ;;  %v2749_v13 = vpop.eup %2748  ;;  %v2080_v11 = vld [vmem:[%s3569_s17] sm:$0xff] }
0x131b   :  { %2750 = vrcp.f32 %v1741_v12  ;;  %v2234_v12 = vld [vmem:[%s3570_s16] ss:$0 sm:$0xff] }
0x131c   :  { %2752 = vpow2.f32 %v2227_v27  ;;  %v2081_v27 = vld [vmem:[%s3569_s17 + $0x8] sm:$0xff] }
0x1325   :  { %v2751_v20 = vpop.eup %2750 }
0x1326   :  { %v1752_v17 = vmul.f32 %v2751_v20, %v2749_v13  ;;  %v1751_v25 = vmul.f32 %v2751_v20, %v1749_v19  ;;  %v2753_v4 = vpop.eup %2752 }
0x1327   :  { %v1742_v51 = vadd.f32 1.0, %v2753_v4 }
0x1328   :  { %1754 = vrot.lane.b32.xlu1 %v1752_v17, %s2787_s11 }
0x1329   :  { %2754 = vrcp.f32 %v1742_v51 }
0x1333   :  { %v2755_v63 = vpop.eup %2754 }
0x139a   :  { %v1755_v29 = vpop.permute.xlu1 %1754 }
0x139b   :  { %v1757_v30 = vadd.f32 %v1755_v29, %v1751_v25 }
0x139d   :  { %2756 = vtanh.f32 %v1757_v30  ;;  %v1853_v49 = vrot.slane %v1757_v30, 6 }
0x13a7   :  { %v2757_v54 = vpop.eup %2756 }
0x13a8   :  { %v1759_v31 = vmul.f32 %v2757_v54, %v2755_v63 }
0x13aa   :  { %v1761_v32 = vrot.slane %v1759_v31, 6  ;;  %v1874_v56 = vrot.slane %v1759_v31, 2 }
0x13ac   :  { %1762 = vrot.lane.b32.xlu0 %v1761_v32, %s2787_s11  ;;  %v1886_v36 = vsel %vm1881_vm11, %v1885_v35, %v1874_v56 }
0x13b0   :  { %1903 = vrot.lane.b32.xlu0 %v1888_v38, %s2786_s30 }
0x13b4   :  { %2166 = vrot.lane.b32.xlu0 %v1759_v31, %s2788_s12 }
0x13b8   :  { %2176 = vrot.lane.b32.xlu0 %v1757_v30, %s2789_s19 }
0x141e   :  { %v1763_v39 = vpop.permute.xlu0 %1762 }
0x141f   :  { %2228 = vmatmul.mubr.msk.f32.vlgmr.msra.gmra.mrb[22].mxu1 %vm997_vm9, %v1763_v39 }
0x1420   :  { %2574 = vmatpush3.bf16.msra.mxu1 %v2571_v21 }
0x1421   :  { %2318 = vmatprep.subr.mxu1 %v1990_v6 }
0x1422   :  { %v1904_v42 = vpop.permute.xlu0 %1903 }
0x1423   :  { %2311 = vmatprep.mubr.msk.f32.mxu0 %vm837_vm8, %v1904_v42 }
0x1424   :  { %2319 = vmatpush3.msra.mxu1 %v1990_v6 }
0x1426   :  { %v2167_v4 = vpop.permute.xlu0 %2166 }
0x142a   :  { %v2177_v63 = vpop.permute.xlu0 %2176 }
0x14f2   :  { %v1832_v26 = vpop.f32.mrb[22].mxu1 }
0x14f3   :  { %v1837_v43 = vadd.f32 %v1832_v26, %v3256_v24  ;;  %v1834_v44 = vpop.f32.mrb[23].mxu1  ;;  %v1890_v24 = vld [vmem:[%s3566_s13] sm:$0xff] }
0x14f4   :  { %v1838_v16 = vadd.f32 %v1834_v44, %v3263_v28  ;;  %v1892_v28 = vld [vmem:[%s3566_s13 + $0x10] sm:$0xff]  ;;  %v2563_v33 = vpack.c.bf16 %v1891_v41, %v1890_v24  ;;  %s2790_s13 = smov 40  }
0x14f5   :  { %v2229_v40 = vmul.f32 -1.442695, %v1837_v43  ;;  %v2567_v57 = vpack.c.bf16 %v1893_v48, %v1892_v28 }
0x14f6   :  { %2564 = vmatprep.subr.bf16.mxu0 %v2563_v33  ;;  %v2230_v50 = vmul.f32 -1.442695, %v1838_v16 }
0x14f7   :  { %2758 = vpow2.f32 %v2229_v40  ;;  %2566 = vmatpush3.bf16.msra.mxu0 %v2563_v33 }
0x14f8   :  { %2760 = vtanh.f32 %v1838_v16  ;;  %2568 = vmatprep.subr.bf16.mxu0 %v2567_v57 }
0x14fb   :  { %2570 = vmatpush3.bf16.msra.mxu0 %v2567_v57 }
0x1501   :  { %v2759_v45 = vpop.eup %2758 }
0x1502   :  { %v1845_v46 = vadd.f32 1.0, %v2759_v45  ;;  %v2761_v47 = vpop.eup %2760 }
0x1504   :  { %2762 = vrcp.f32 %v1845_v46 }
0x1505   :  { %2764 = vpow2.f32 %v2230_v50 }
0x150e   :  { %v2763_v53 = vpop.eup %2762 }
0x150f   :  { %v1856_v22 = vmul.f32 %v2763_v53, %v2761_v47  ;;  %v1855_v34 = vmul.f32 %v2763_v53, %v1853_v49  ;;  %v2765_v55 = vpop.eup %2764 }
0x1510   :  { %v1846_v59 = vadd.f32 1.0, %v2765_v55 }
0x1511   :  { %1858 = vrot.lane.b32.xlu1 %v1856_v22, %s2787_s11 }
0x1512   :  { %2766 = vrcp.f32 %v1846_v59 }
0x151c   :  { %v2767_v58 = vpop.eup %2766 }
0x1583   :  { %v1859_v52 = vpop.permute.xlu1 %1858 }
0x1584   :  { %v1861_v60 = vadd.f32 %v1859_v52, %v1855_v34 }
0x1586   :  { %2768 = vtanh.f32 %v1861_v60 }
0x1590   :  { %v2769_v1 = vpop.eup %2768 }
0x1591   :  { %v1863_v61 = vmul.f32 %v2769_v1, %v2767_v58 }
0x1593   :  { %v1877_v62 = vrot.slane %v1863_v61, 2 }
0x1595   :  { %v1887_v0 = vsel %vm1883_vm12, %v1886_v36, %v1877_v62 }
0x1596   :  { %v1889_v2 = vmax.f32 %v1887_v0, 0.0 }
0x1598   :  { %1905 = vrot.lane.b32.xlu1 %v1889_v2, %s2786_s30 }
0x159c   :  { %2171 = vrot.lane.b32.xlu1 %v1863_v61, %s2790_s13 }
0x15a0   :  { %2182 = vrot.lane.b32.xlu1 %v1861_v60, %s2788_s12 }
0x160a   :  { %v1906_v3 = vpop.permute.xlu1 %1905 }
0x160b   :  { %2312 = vmatmul.mubr.msk.f32.vlgmr.msra.gmra.mrb[12].mxu0 %vm837_vm8, %v1906_v3 }
0x160c   :  { %2327 = vmatprep.mubr.msk.f32.mxu0 %vm834_vm7, %v2080_v11 }
0x160e   :  { %v2172_v51 = vpop.permute.xlu1 %2171 }
0x1612   :  { %v2183_v54 = vpop.permute.xlu1 %2182 }
0x16de   :  { %v2313_v8 = vpop.f32.mrb[12].mxu0 }
0x16df   :  { %v1983_v15 = vadd.f32 %v2313_v8, %v2231_v7  ;;  %v1977_v18 = vpop.f32.mrb[13].mxu0 }
0x16e0   :  { %v1978_v9 = vadd.f32 %v2231_v7, %v1977_v18 }
0x16e1   :  { %v1987_v10 = vmax.f32 %v1983_v15, 0.0 }
0x16e2   :  { %v1986_v23 = vmax.f32 %v1978_v9, 0.0 }
0x16e4   :  { %2320 = vmatprep.mubr.msk.f32.mxu1 %vm1998_vm13, %v1986_v23 }
0x16e5   :  { %2321 = vmatmul.mubr.msk.f32.vlgmr.msra.gmra.mrb[24].mxu1 %vm1998_vm13, %v1987_v10 }
0x17b8   :  { %v2322_v13 = vpop.f32.mrb[24].mxu1 }
0x17b9   :  { %v2077_v19 = vadd.f32 %v2322_v13, %v2234_v12  ;;  %v2071_v20 = vpop.f32.mrb[25].mxu1 }
0x17ba   :  { %v2072_v17 = vadd.f32 %v2234_v12, %v2071_v20 }
0x17bc   :  { %v2575_v25 = vpack.c.bf16 %v2077_v19, %v2072_v17 }
0x17be   :  { %2576 = vmatprep.subr.bf16.mxu0 %v2575_v25 }
0x17bf   :  { %2578 = vmatpush3.bf16.msra.mxu0 %v2575_v25 }
0x17c2   :  { %2328 = vmatmul.mubr.msk.f32.vlgmr.msra.gmra.mrb[14].mxu0 %vm834_vm7, %v2081_v27 }
0x1895   :  { %v2329_v29 = vpop.f32.mrb[14].mxu0 }
0x1896   :  { %2165 = vst.msk [vmem:[%s3571_s18 + $0x8] sm:$0xff] %vm2163_vm14, %v2329_v29  ;;  %v2154_v30 = vpop.f32.mrb[15].mxu0 }
0x1897   :  { %2164 = vst.msk [vmem:[%s3571_s18] sm:$0xff] %vm2163_vm14, %v2154_v30 }
0x1898   :  { %2170 = vst.msk [vmem:[%s3571_s18 - $0x6] sm:$0xc0] %vm2169_vm15, %v2167_v4 }
0x1899   :  { %2175 = vst.msk [vmem:[%s3571_s18 + $0x2] sm:$0x3] %vm2174_vm0, %v2172_v51 }
0x189a   :  { %2180 = vst.msk [vmem:[%s3571_s18 - $0x6] sm:$0xc0] %vm2179_vm1, %v2177_v63 }
0x189b   :  { %2186 = vst.msk [vmem:[%s3571_s18 + $0x2] sm:$0x3] %vm2185_vm2, %v2183_v54 }

</bundles_post_ra>
